<compile_context>
chip_gen: v7x
topology: tpu7x:2x2x1
jax: 0.10.0
libtpu: 0.0.40
codegen_flags: <defaults>
</compile_context>

<pallas_src>
import functools

import jax
import jax.numpy as jnp
import numpy as np
from jax.experimental import pallas as pl
from jax.experimental.pallas import tpu as pltpu


def _round_up(x, m):
    return ((x + m - 1) // m) * m


# ----------------------------------------------------------------------------
# Fused kernel: one grid step == one LSTM layer (last step also runs FC head)
# ----------------------------------------------------------------------------
def make_lstm_kernel(T, Bp, K, Hp, L):
    """Kernel args:
       x_ref   : (T*Bp, K)  bf16, time-major (rows t*Bp:(t+1)*Bp = timestep t)
       wih_ref : (K, 4Hp)   bf16, this layer's input weights (pre-transposed)
       whh_ref : (Hp, 4Hp)  bf16, recurrent weights (pre-transposed)
       b_ref   : (1, 4Hp)   f32,  bih + bhh
       fcw_ref : (Hp, Op)   bf16, fc_b_ref : (1, Op) f32
       out_ref : (Bp, Op)   f32
       seq_ref : (T*Bp, K)  bf16 VMEM scratch, layer output seq -> next layer
    """
    G = 4 * Hp

    def kernel(x_ref, wih_ref, whh_ref, b_ref, fcw_ref, fcb_ref, out_ref,
               seq_ref):
        l = pl.program_id(0)

        # Seed the sequence scratch with the input on the first layer.
        @pl.when(l == 0)
        def _():
            seq_ref[...] = x_ref[...]

        layer_in = seq_ref[...]                                   # (T*Bp, K) bf16
        wih = wih_ref[...]                                        # (K, G) bf16
        whh = whh_ref[...]                                        # (Hp, G) bf16
        b = b_ref[...]                                            # (1, G) f32

        # Hoisted input projection: one big bf16 MXU matmul per layer.
        # TODO(synk): for large T, chunk this over time into a double-buffered
        # VMEM scratch via pltpu.emit_pipeline and overlap with the recurrence.
        gx = jnp.dot(layer_in, wih,
                     preferred_element_type=jnp.float32) + b      # (T*Bp, G) f32

        h = jnp.zeros((Bp, Hp), jnp.float32)
        c = jnp.zeros((Bp, Hp), jnp.float32)
        hs = []
        # TODO(synk): for large T replace the Python unroll with
        # lax.fori_loop(..., unroll=4..8) over a (T, Bp, G) scratch.
        # TODO(synk): on v6e/v7x hold Whh in the MXU staging registers across
        # the time loop (pltpu.matmul_push_rhs / matmul_acc_lhs).
        for t in range(T):
            gates = (gx[t * Bp:(t + 1) * Bp, :]
                     + jnp.dot(h.astype(jnp.bfloat16), whh,
                               preferred_element_type=jnp.float32))
            i_g = jax.nn.sigmoid(gates[:, 0 * Hp:1 * Hp])
            f_g = jax.nn.sigmoid(gates[:, 1 * Hp:2 * Hp])
            g_g = jnp.tanh(gates[:, 2 * Hp:3 * Hp])
            o_g = jax.nn.sigmoid(gates[:, 3 * Hp:4 * Hp])
            c = f_g * c + i_g * g_g
            h = o_g * jnp.tanh(c)
            hs.append(h)

        # Feed the next layer: one full-tile store (hs stayed vreg-resident).
        @pl.when(l < L - 1)
        def _():
            seq_ref[:, 0:Hp] = jnp.concatenate(hs, axis=0).astype(jnp.bfloat16)

        # Fused FC head on the last layer's final hidden state.
        @pl.when(l == L - 1)
        def _():
            out_ref[...] = (jnp.dot(h.astype(jnp.bfloat16), fcw_ref[...],
                                    preferred_element_type=jnp.float32)
                            + fcb_ref[...])

    return kernel


# ----------------------------------------------------------------------------
# Wrapper
# ----------------------------------------------------------------------------
@functools.partial(jax.jit, static_argnames=("output_dim",))
def lstm_model_forward(x_btd, packed, *, output_dim):
    """Reproduces LSTMModel.forward: multi-layer LSTM (zero init state), then
    Linear on the last timestep's hidden state of the last layer."""
    B, T, D = x_btd.shape
    L, K, G = packed["wih"].shape          # (L, K, 4Hp)
    Hp = G // 4
    Op = packed["fc_w"].shape[1]
    Bp = _round_up(max(B, 8), 8)           # full (8,128) sublane tiles
    # TODO(synk): pad Bp toward 128/256 (or add a "parallel" batch grid axis
    # on v7x) when the real batch is large enough to occupy the MXU rows.

    # Time-major, batch/feature zero-padded, bf16 for the MXU.
    # TODO(synk): for large T*B*D feed x per-time-chunk via a BlockSpec
    # index_map instead of this wrapper-side transpose/pad (extra HBM pass).
    xt = jnp.transpose(x_btd, (1, 0, 2))                         # (T, B, D)
    xt = jnp.pad(xt, ((0, 0), (0, Bp - B), (0, K - D)))
    x2d = xt.reshape(T * Bp, K).astype(jnp.bfloat16)

    kernel = make_lstm_kernel(T, Bp, K, Hp, L)

    out = pl.pallas_call(
        kernel,
        grid=(L,),
        in_specs=[
            pl.BlockSpec((T * Bp, K), lambda l: (0, 0)),          # x (resident)
            pl.BlockSpec((None, K, G), lambda l: (l, 0, 0)),      # wih: per layer
            pl.BlockSpec((None, Hp, G), lambda l: (l, 0, 0)),     # whh: per layer
            pl.BlockSpec((None, 1, G), lambda l: (l, 0, 0)),      # bias: per layer
            pl.BlockSpec((Hp, Op), lambda l: (0, 0)),             # fc_w (resident)
            pl.BlockSpec((1, Op), lambda l: (0, 0)),              # fc_b
        ],
        out_specs=pl.BlockSpec((Bp, Op), lambda l: (0, 0)),
        out_shape=jax.ShapeDtypeStruct((Bp, Op), jnp.float32),
        scratch_shapes=[pltpu.VMEM((T * Bp, K), jnp.bfloat16)],   # layer out seq
        compiler_params=pltpu.CompilerParams(
            dimension_semantics=("arbitrary",),                   # layers are serial
            vmem_limit_bytes=48 * 1024 * 1024),                   # safe on v5e/v6e/v7x
    )(x2d, packed["wih"], packed["whh"], packed["b"],
      packed["fc_w"], packed["fc_b"])

    return out[:B, :output_dim]


# ----------------------------------------------------------------------------
# Parameter init (PyTorch-style U(-1/sqrt(H), 1/sqrt(H))) and packing
# ----------------------------------------------------------------------------
def init_params(key, input_dim, hidden_dim, layer_dim, output_dim):
    k = 1.0 / np.sqrt(hidden_dim)
    params = {"lstm": []}
    for layer in range(layer_dim):
        d_in = input_dim if layer == 0 else hidden_dim
        key, k1, k2, k3, k4 = jax.random.split(key, 5)
        wih = jax.random.uniform(k1, (4 * hidden_dim, d_in), jnp.float32, -k, k)
        whh = jax.random.uniform(k2, (4 * hidden_dim, hidden_dim), jnp.float32, -k, k)
        bih = jax.random.uniform(k3, (4 * hidden_dim,), jnp.float32, -k, k)
        bhh = jax.random.uniform(k4, (4 * hidden_dim,), jnp.float32, -k, k)
        params["lstm"].append((wih, whh, bih, bhh))
    key, k5, k6 = jax.random.split(key, 3)
    params["fc_w"] = jax.random.uniform(k5, (output_dim, hidden_dim), jnp.float32, -k, k)
    params["fc_b"] = jax.random.uniform(k6, (output_dim,), jnp.float32, -k, k)
    return params


def pack_params(params, input_dim, hidden_dim, layer_dim, output_dim):
    """Pre-transpose, gate-wise pad H->Hp (mult. of 128), zero-pad rows to a
    shared K, stack per-layer weights, cast matmul operands to bf16."""
    D, H, L, O = input_dim, hidden_dim, layer_dim, output_dim
    Hp = _round_up(H, 128)
    K = max(_round_up(D, 128), Hp)
    Op = _round_up(O, 128)
    G = 4 * Hp

    def gate_pad_cols(w_t):  # (rows, 4H) -> (rows, 4Hp), keeps [i,f,g,o] order
        rows = w_t.shape[0]
        w4 = w_t.reshape(rows, 4, H)
        return jnp.pad(w4, ((0, 0), (0, 0), (0, Hp - H))).reshape(rows, G)

    wih_l, whh_l, b_l = [], [], []
    for layer, (wih, whh, bih, bhh) in enumerate(params["lstm"]):
        d_in = D if layer == 0 else H
        wih_t = gate_pad_cols(wih.T)                       # (d_in, 4Hp)
        wih_t = jnp.pad(wih_t, ((0, K - d_in), (0, 0)))    # (K, 4Hp)
        whh_t = gate_pad_cols(whh.T)                       # (H, 4Hp)
        whh_t = jnp.pad(whh_t, ((0, Hp - H), (0, 0)))      # (Hp, 4Hp)
        b = gate_pad_cols((bih + bhh).reshape(1, -1))      # (1, 4Hp)
        wih_l.append(wih_t)
        whh_l.append(whh_t)
        b_l.append(b)

    packed = {
        "wih": jnp.stack(wih_l).astype(jnp.bfloat16),      # (L, K, 4Hp)
        "whh": jnp.stack(whh_l).astype(jnp.bfloat16),      # (L, Hp, 4Hp)
        "b": jnp.stack(b_l).astype(jnp.float32),           # (L, 1, 4Hp)
        "fc_w": jnp.pad(params["fc_w"].T,
                        ((0, Hp - H), (0, Op - O))).astype(jnp.bfloat16),  # (Hp, Op)
        "fc_b": jnp.pad(params["fc_b"].reshape(1, -1),
                        ((0, 0), (0, Op - O))).astype(jnp.float32),        # (1, Op)
    }
    return packed


# ----------------------------------------------------------------------------
# Pure-JAX f32 reference (same math as PyTorch) for correctness check
# ----------------------------------------------------------------------------
def ref_forward(x_btd, params):
    layer_in = x_btd
    for (wih, whh, bih, bhh) in params["lstm"]:
        B = layer_in.shape[0]
        H = whh.shape[1]
        wih_t, whh_t = wih.T, whh.T
        b = (bih + bhh)[None, :]

        def step(carry, x_t, wih_t=wih_t, whh_t=whh_t, b=b):
            h, c = carry
            gates = x_t @ wih_t + h @ whh_t + b
            i, f, g, o = jnp.split(gates, 4, axis=-1)
            i, f, o = jax.nn.sigmoid(i), jax.nn.sigmoid(f), jax.nn.sigmoid(o)
            g = jnp.tanh(g)
            c = f * c + i * g
            h = o * jnp.tanh(c)
            return (h, c), h

        init = (jnp.zeros((B, H), jnp.float32), jnp.zeros((B, H), jnp.float32))
        _, hs = jax.lax.scan(step, init, jnp.transpose(layer_in, (1, 0, 2)))
        layer_in = jnp.transpose(hs, (1, 0, 2))
    return layer_in[:, -1, :] @ params["fc_w"].T + params["fc_b"]


if __name__ == "__main__":
    # Small shapes consistent with the module's forward.
    batch, seq_len = 2, 8
    input_dim, hidden_dim, layer_dim, output_dim = 16, 32, 2, 10

    key = jax.random.PRNGKey(0)
    key, xk = jax.random.split(key)
    x = jax.random.normal(xk, (batch, seq_len, input_dim), jnp.float32)

    params = init_params(key, input_dim, hidden_dim, layer_dim, output_dim)
    packed = pack_params(params, input_dim, hidden_dim, layer_dim, output_dim)

    out = lstm_model_forward(x, packed, output_dim=output_dim)
    out = jax.block_until_ready(out)

    ref = jax.block_until_ready(ref_forward(x, params))
    # bf16 matmul operands (f32 accumulate / f32 state) -> loosened tolerance
    # vs. the pure-f32 reference.
    np.testing.assert_allclose(np.asarray(out), np.asarray(ref),
                               rtol=3e-2, atol=3e-2)
    assert out.shape == (batch, output_dim)
    print("KERNEL_OK")
</pallas_src>

<mosaic_0001>
module attributes {stable_mosaic.version = 11 : i64} {
  func.func @kernel(%arg0: i32, %arg1: memref<64x128xbf16, #tpu.memory_space<vmem>>, %arg2: memref<1x128x512xbf16, #tpu.memory_space<vmem>>, %arg3: memref<1x128x512xbf16, #tpu.memory_space<vmem>>, %arg4: memref<1x1x512xf32, #tpu.memory_space<vmem>>, %arg5: memref<128x128xbf16, #tpu.memory_space<vmem>>, %arg6: memref<1x128xf32, #tpu.memory_space<vmem>>, %arg7: memref<8x128xf32, #tpu.memory_space<vmem>>, %arg8: memref<64x128xbf16, #tpu.memory_space<vmem>>) attributes {dimension_semantics = [#tpu.dimension_semantics<arbitrary>], iteration_bounds = array<i64: 2>, scalar_prefetch = 0 : i64, scratch_operands = 1 : i64, tpu.core_type = #tpu.core_type<tc>, window_params = [{pipeline_mode = #tpu.pipeline_mode<synchronous>, transform_indices = @transform_0, window_bounds = array<i64: 64, 128>}, {transform_indices = @transform_1, window_bounds = array<i64: 1, 128, 512>}, {transform_indices = @transform_2, window_bounds = array<i64: 1, 128, 512>}, {transform_indices = @transform_3, window_bounds = array<i64: 1, 1, 512>}, {pipeline_mode = #tpu.pipeline_mode<synchronous>, transform_indices = @transform_4, window_bounds = array<i64: 128, 128>}, {pipeline_mode = #tpu.pipeline_mode<synchronous>, transform_indices = @transform_5, window_bounds = array<i64: 1, 128>}, {pipeline_mode = #tpu.pipeline_mode<synchronous>, transform_indices = @transform_6, window_bounds = array<i64: 8, 128>}]} {
    %c0_i32 = arith.constant 0 : i32
    %0 = arith.cmpi eq, %arg0, %c0_i32 : i32
    %1 = arith.extui %0 : i1 to i32
    %c0_i32_0 = arith.constant 0 : i32
    %2 = arith.cmpi ne, %1, %c0_i32_0 : i32
    scf.if %2 {
      %c0_48 = arith.constant 0 : index
      %c0_49 = arith.constant 0 : index
      %253 = vector.load %arg1[%c0_48, %c0_49] : memref<64x128xbf16, #tpu.memory_space<vmem>>, vector<64x128xbf16>
      %c0_50 = arith.constant 0 : index
      %c0_51 = arith.constant 0 : index
      %254 = vector.load %arg8[%c0_50, %c0_51] : memref<64x128xbf16, #tpu.memory_space<vmem>>, vector<64x128xbf16>
      tpu.vector_store %arg8[%c0_50, %c0_51], %253 {strides = array<i32>} : memref<64x128xbf16, #tpu.memory_space<vmem>>, vector<64x128xbf16>,
    } else {
    }
    %c0 = arith.constant 0 : index
    %c0_1 = arith.constant 0 : index
    %3 = vector.load %arg8[%c0, %c0_1] : memref<64x128xbf16, #tpu.memory_space<vmem>>, vector<64x128xbf16>
    %c0_2 = arith.constant 0 : index
    %c0_3 = arith.constant 0 : index
    %c0_4 = arith.constant 0 : index
    %4 = vector.load %arg2[%c0_2, %c0_3, %c0_4] : memref<1x128x512xbf16, #tpu.memory_space<vmem>>, vector<1x128x512xbf16>
    %5 = vector.shape_cast %4 : vector<1x128x512xbf16> to vector<128x512xbf16>
    %c0_5 = arith.constant 0 : index
    %c0_6 = arith.constant 0 : index
    %c0_7 = arith.constant 0 : index
    %6 = vector.load %arg3[%c0_5, %c0_6, %c0_7] : memref<1x128x512xbf16, #tpu.memory_space<vmem>>, vector<1x128x512xbf16>
    %7 = vector.shape_cast %6 : vector<1x128x512xbf16> to vector<128x512xbf16>
    %c0_8 = arith.constant 0 : index
    %c0_9 = arith.constant 0 : index
    %c0_10 = arith.constant 0 : index
    %8 = vector.load %arg4[%c0_8, %c0_9, %c0_10] : memref<1x1x512xf32, #tpu.memory_space<vmem>>, vector<1x1x512xf32>
    %9 = vector.shape_cast %8 : vector<1x1x512xf32> to vector<1x512xf32>
    %cst = arith.constant dense<0.000000e+00> : vector<64x512xf32>
    %10 = tpu.matmul %3, %5, %cst {dimension_numbers = #tpu.dot_dimension_numbers<[1], [0], [0], [1], [0, 0, 1, 1], [], []>} : vector<64x128xbf16>, vector<128x512xbf16>, vector<64x512xf32> -> vector<64x512xf32>
    %11 = vector.broadcast %9 : vector<1x512xf32> to vector<64x512xf32>
    %12 = arith.addf %10, %11 : vector<64x512xf32>
    %cst_11 = arith.constant 0.000000e+00 : f32
    %13 = vector.broadcast %cst_11 : f32 to vector<8x128xf32>
    %cst_12 = arith.constant 0.000000e+00 : f32
    %14 = vector.broadcast %cst_12 : f32 to vector<8x128xf32>
    %15 = vector.extract_strided_slice %12 {offsets = [0, 0], sizes = [8, 512], strides = [1, 1]} : vector<64x512xf32> to vector<8x512xf32>
    %16 = arith.truncf %13 : vector<8x128xf32> to vector<8x128xbf16>
    %cst_13 = arith.constant dense<0.000000e+00> : vector<8x512xf32>
    %17 = tpu.matmul %16, %7, %cst_13 {dimension_numbers = #tpu.dot_dimension_numbers<[1], [0], [0], [1], [0, 0, 1, 1], [], []>} : vector<8x128xbf16>, vector<128x512xbf16>, vector<8x512xf32> -> vector<8x512xf32>
    %18 = arith.addf %15, %17 : vector<8x512xf32>
    %19 = vector.extract_strided_slice %18 {offsets = [0, 0], sizes = [8, 128], strides = [1, 1]} : vector<8x512xf32> to vector<8x128xf32>
    %20 = arith.negf %19 : vector<8x128xf32>
    %21 = math.exp %20 : vector<8x128xf32>
    %cst_14 = arith.constant 1.000000e+00 : f32
    %22 = vector.broadcast %cst_14 : f32 to vector<8x128xf32>
    %23 = arith.addf %22, %21 : vector<8x128xf32>
    %24 = arith.divf %22, %23 : vector<8x128xf32>
    %25 = vector.extract_strided_slice %18 {offsets = [0, 128], sizes = [8, 128], strides = [1, 1]} : vector<8x512xf32> to vector<8x128xf32>
    %26 = arith.negf %25 : vector<8x128xf32>
    %27 = math.exp %26 : vector<8x128xf32>
    %cst_15 = arith.constant 1.000000e+00 : f32
    %28 = vector.broadcast %cst_15 : f32 to vector<8x128xf32>
    %29 = arith.addf %28, %27 : vector<8x128xf32>
    %30 = arith.divf %28, %29 : vector<8x128xf32>
    %31 = vector.extract_strided_slice %18 {offsets = [0, 256], sizes = [8, 128], strides = [1, 1]} : vector<8x512xf32> to vector<8x128xf32>
    %32 = math.tanh %31 : vector<8x128xf32>
    %33 = vector.extract_strided_slice %18 {offsets = [0, 384], sizes = [8, 128], strides = [1, 1]} : vector<8x512xf32> to vector<8x128xf32>
    %34 = arith.negf %33 : vector<8x128xf32>
    %35 = math.exp %34 : vector<8x128xf32>
    %cst_16 = arith.constant 1.000000e+00 : f32
    %36 = vector.broadcast %cst_16 : f32 to vector<8x128xf32>
    %37 = arith.addf %36, %35 : vector<8x128xf32>
    %38 = arith.divf %36, %37 : vector<8x128xf32>
    %39 = arith.mulf %30, %14 : vector<8x128xf32>
    %40 = arith.mulf %24, %32 : vector<8x128xf32>
    %41 = arith.addf %39, %40 : vector<8x128xf32>
    %42 = math.tanh %41 : vector<8x128xf32>
    %43 = arith.mulf %38, %42 : vector<8x128xf32>
    %44 = vector.extract_strided_slice %12 {offsets = [8, 0], sizes = [8, 512], strides = [1, 1]} : vector<64x512xf32> to vector<8x512xf32>
    %45 = arith.truncf %43 : vector<8x128xf32> to vector<8x128xbf16>
    %cst_17 = arith.constant dense<0.000000e+00> : vector<8x512xf32>
    %46 = tpu.matmul %45, %7, %cst_17 {dimension_numbers = #tpu.dot_dimension_numbers<[1], [0], [0], [1], [0, 0, 1, 1], [], []>} : vector<8x128xbf16>, vector<128x512xbf16>, vector<8x512xf32> -> vector<8x512xf32>
    %47 = arith.addf %44, %46 : vector<8x512xf32>
    %48 = vector.extract_strided_slice %47 {offsets = [0, 0], sizes = [8, 128], strides = [1, 1]} : vector<8x512xf32> to vector<8x128xf32>
    %49 = arith.negf %48 : vector<8x128xf32>
    %50 = math.exp %49 : vector<8x128xf32>
    %cst_18 = arith.constant 1.000000e+00 : f32
    %51 = vector.broadcast %cst_18 : f32 to vector<8x128xf32>
    %52 = arith.addf %51, %50 : vector<8x128xf32>
    %53 = arith.divf %51, %52 : vector<8x128xf32>
    %54 = vector.extract_strided_slice %47 {offsets = [0, 128], sizes = [8, 128], strides = [1, 1]} : vector<8x512xf32> to vector<8x128xf32>
    %55 = arith.negf %54 : vector<8x128xf32>
    %56 = math.exp %55 : vector<8x128xf32>
    %cst_19 = arith.constant 1.000000e+00 : f32
    %57 = vector.broadcast %cst_19 : f32 to vector<8x128xf32>
    %58 = arith.addf %57, %56 : vector<8x128xf32>
    %59 = arith.divf %57, %58 : vector<8x128xf32>
    %60 = vector.extract_strided_slice %47 {offsets = [0, 256], sizes = [8, 128], strides = [1, 1]} : vector<8x512xf32> to vector<8x128xf32>
    %61 = math.tanh %60 : vector<8x128xf32>
    %62 = vector.extract_strided_slice %47 {offsets = [0, 384], sizes = [8, 128], strides = [1, 1]} : vector<8x512xf32> to vector<8x128xf32>
    %63 = arith.negf %62 : vector<8x128xf32>
    %64 = math.exp %63 : vector<8x128xf32>
    %cst_20 = arith.constant 1.000000e+00 : f32
    %65 = vector.broadcast %cst_20 : f32 to vector<8x128xf32>
    %66 = arith.addf %65, %64 : vector<8x128xf32>
    %67 = arith.divf %65, %66 : vector<8x128xf32>
    %68 = arith.mulf %59, %41 : vector<8x128xf32>
    %69 = arith.mulf %53, %61 : vector<8x128xf32>
    %70 = arith.addf %68, %69 : vector<8x128xf32>
    %71 = math.tanh %70 : vector<8x128xf32>
    %72 = arith.mulf %67, %71 : vector<8x128xf32>
    %73 = vector.extract_strided_slice %12 {offsets = [16, 0], sizes = [8, 512], strides = [1, 1]} : vector<64x512xf32> to vector<8x512xf32>
    %74 = arith.truncf %72 : vector<8x128xf32> to vector<8x128xbf16>
    %cst_21 = arith.constant dense<0.000000e+00> : vector<8x512xf32>
    %75 = tpu.matmul %74, %7, %cst_21 {dimension_numbers = #tpu.dot_dimension_numbers<[1], [0], [0], [1], [0, 0, 1, 1], [], []>} : vector<8x128xbf16>, vector<128x512xbf16>, vector<8x512xf32> -> vector<8x512xf32>
    %76 = arith.addf %73, %75 : vector<8x512xf32>
    %77 = vector.extract_strided_slice %76 {offsets = [0, 0], sizes = [8, 128], strides = [1, 1]} : vector<8x512xf32> to vector<8x128xf32>
    %78 = arith.negf %77 : vector<8x128xf32>
    %79 = math.exp %78 : vector<8x128xf32>
    %cst_22 = arith.constant 1.000000e+00 : f32
    %80 = vector.broadcast %cst_22 : f32 to vector<8x128xf32>
    %81 = arith.addf %80, %79 : vector<8x128xf32>
    %82 = arith.divf %80, %81 : vector<8x128xf32>
    %83 = vector.extract_strided_slice %76 {offsets = [0, 128], sizes = [8, 128], strides = [1, 1]} : vector<8x512xf32> to vector<8x128xf32>
    %84 = arith.negf %83 : vector<8x128xf32>
    %85 = math.exp %84 : vector<8x128xf32>
    %cst_23 = arith.constant 1.000000e+00 : f32
    %86 = vector.broadcast %cst_23 : f32 to vector<8x128xf32>
    %87 = arith.addf %86, %85 : vector<8x128xf32>
    %88 = arith.divf %86, %87 : vector<8x128xf32>
    %89 = vector.extract_strided_slice %76 {offsets = [0, 256], sizes = [8, 128], strides = [1, 1]} : vector<8x512xf32> to vector<8x128xf32>
    %90 = math.tanh %89 : vector<8x128xf32>
    %91 = vector.extract_strided_slice %76 {offsets = [0, 384], sizes = [8, 128], strides = [1, 1]} : vector<8x512xf32> to vector<8x128xf32>
    %92 = arith.negf %91 : vector<8x128xf32>
    %93 = math.exp %92 : vector<8x128xf32>
    %cst_24 = arith.constant 1.000000e+00 : f32
    %94 = vector.broadcast %cst_24 : f32 to vector<8x128xf32>
    %95 = arith.addf %94, %93 : vector<8x128xf32>
    %96 = arith.divf %94, %95 : vector<8x128xf32>
    %97 = arith.mulf %88, %70 : vector<8x128xf32>
    %98 = arith.mulf %82, %90 : vector<8x128xf32>
    %99 = arith.addf %97, %98 : vector<8x128xf32>
    %100 = math.tanh %99 : vector<8x128xf32>
    %101 = arith.mulf %96, %100 : vector<8x128xf32>
    %102 = vector.extract_strided_slice %12 {offsets = [24, 0], sizes = [8, 512], strides = [1, 1]} : vector<64x512xf32> to vector<8x512xf32>
    %103 = arith.truncf %101 : vector<8x128xf32> to vector<8x128xbf16>
    %cst_25 = arith.constant dense<0.000000e+00> : vector<8x512xf32>
    %104 = tpu.matmul %103, %7, %cst_25 {dimension_numbers = #tpu.dot_dimension_numbers<[1], [0], [0], [1], [0, 0, 1, 1], [], []>} : vector<8x128xbf16>, vector<128x512xbf16>, vector<8x512xf32> -> vector<8x512xf32>
    %105 = arith.addf %102, %104 : vector<8x512xf32>
    %106 = vector.extract_strided_slice %105 {offsets = [0, 0], sizes = [8, 128], strides = [1, 1]} : vector<8x512xf32> to vector<8x128xf32>
    %107 = arith.negf %106 : vector<8x128xf32>
    %108 = math.exp %107 : vector<8x128xf32>
    %cst_26 = arith.constant 1.000000e+00 : f32
    %109 = vector.broadcast %cst_26 : f32 to vector<8x128xf32>
    %110 = arith.addf %109, %108 : vector<8x128xf32>
    %111 = arith.divf %109, %110 : vector<8x128xf32>
    %112 = vector.extract_strided_slice %105 {offsets = [0, 128], sizes = [8, 128], strides = [1, 1]} : vector<8x512xf32> to vector<8x128xf32>
    %113 = arith.negf %112 : vector<8x128xf32>
    %114 = math.exp %113 : vector<8x128xf32>
    %cst_27 = arith.constant 1.000000e+00 : f32
    %115 = vector.broadcast %cst_27 : f32 to vector<8x128xf32>
    %116 = arith.addf %115, %114 : vector<8x128xf32>
    %117 = arith.divf %115, %116 : vector<8x128xf32>
    %118 = vector.extract_strided_slice %105 {offsets = [0, 256], sizes = [8, 128], strides = [1, 1]} : vector<8x512xf32> to vector<8x128xf32>
    %119 = math.tanh %118 : vector<8x128xf32>
    %120 = vector.extract_strided_slice %105 {offsets = [0, 384], sizes = [8, 128], strides = [1, 1]} : vector<8x512xf32> to vector<8x128xf32>
    %121 = arith.negf %120 : vector<8x128xf32>
    %122 = math.exp %121 : vector<8x128xf32>
    %cst_28 = arith.constant 1.000000e+00 : f32
    %123 = vector.broadcast %cst_28 : f32 to vector<8x128xf32>
    %124 = arith.addf %123, %122 : vector<8x128xf32>
    %125 = arith.divf %123, %124 : vector<8x128xf32>
    %126 = arith.mulf %117, %99 : vector<8x128xf32>
    %127 = arith.mulf %111, %119 : vector<8x128xf32>
    %128 = arith.addf %126, %127 : vector<8x128xf32>
    %129 = math.tanh %128 : vector<8x128xf32>
    %130 = arith.mulf %125, %129 : vector<8x128xf32>
    %131 = vector.extract_strided_slice %12 {offsets = [32, 0], sizes = [8, 512], strides = [1, 1]} : vector<64x512xf32> to vector<8x512xf32>
    %132 = arith.truncf %130 : vector<8x128xf32> to vector<8x128xbf16>
    %cst_29 = arith.constant dense<0.000000e+00> : vector<8x512xf32>
    %133 = tpu.matmul %132, %7, %cst_29 {dimension_numbers = #tpu.dot_dimension_numbers<[1], [0], [0], [1], [0, 0, 1, 1], [], []>} : vector<8x128xbf16>, vector<128x512xbf16>, vector<8x512xf32> -> vector<8x512xf32>
    %134 = arith.addf %131, %133 : vector<8x512xf32>
    %135 = vector.extract_strided_slice %134 {offsets = [0, 0], sizes = [8, 128], strides = [1, 1]} : vector<8x512xf32> to vector<8x128xf32>
    %136 = arith.negf %135 : vector<8x128xf32>
    %137 = math.exp %136 : vector<8x128xf32>
    %cst_30 = arith.constant 1.000000e+00 : f32
    %138 = vector.broadcast %cst_30 : f32 to vector<8x128xf32>
    %139 = arith.addf %138, %137 : vector<8x128xf32>
    %140 = arith.divf %138, %139 : vector<8x128xf32>
    %141 = vector.extract_strided_slice %134 {offsets = [0, 128], sizes = [8, 128], strides = [1, 1]} : vector<8x512xf32> to vector<8x128xf32>
    %142 = arith.negf %141 : vector<8x128xf32>
    %143 = math.exp %142 : vector<8x128xf32>
    %cst_31 = arith.constant 1.000000e+00 : f32
    %144 = vector.broadcast %cst_31 : f32 to vector<8x128xf32>
    %145 = arith.addf %144, %143 : vector<8x128xf32>
    %146 = arith.divf %144, %145 : vector<8x128xf32>
    %147 = vector.extract_strided_slice %134 {offsets = [0, 256], sizes = [8, 128], strides = [1, 1]} : vector<8x512xf32> to vector<8x128xf32>
    %148 = math.tanh %147 : vector<8x128xf32>
    %149 = vector.extract_strided_slice %134 {offsets = [0, 384], sizes = [8, 128], strides = [1, 1]} : vector<8x512xf32> to vector<8x128xf32>
    %150 = arith.negf %149 : vector<8x128xf32>
    %151 = math.exp %150 : vector<8x128xf32>
    %cst_32 = arith.constant 1.000000e+00 : f32
    %152 = vector.broadcast %cst_32 : f32 to vector<8x128xf32>
    %153 = arith.addf %152, %151 : vector<8x128xf32>
    %154 = arith.divf %152, %153 : vector<8x128xf32>
    %155 = arith.mulf %146, %128 : vector<8x128xf32>
    %156 = arith.mulf %140, %148 : vector<8x128xf32>
    %157 = arith.addf %155, %156 : vector<8x128xf32>
    %158 = math.tanh %157 : vector<8x128xf32>
    %159 = arith.mulf %154, %158 : vector<8x128xf32>
    %160 = vector.extract_strided_slice %12 {offsets = [40, 0], sizes = [8, 512], strides = [1, 1]} : vector<64x512xf32> to vector<8x512xf32>
    %161 = arith.truncf %159 : vector<8x128xf32> to vector<8x128xbf16>
    %cst_33 = arith.constant dense<0.000000e+00> : vector<8x512xf32>
    %162 = tpu.matmul %161, %7, %cst_33 {dimension_numbers = #tpu.dot_dimension_numbers<[1], [0], [0], [1], [0, 0, 1, 1], [], []>} : vector<8x128xbf16>, vector<128x512xbf16>, vector<8x512xf32> -> vector<8x512xf32>
    %163 = arith.addf %160, %162 : vector<8x512xf32>
    %164 = vector.extract_strided_slice %163 {offsets = [0, 0], sizes = [8, 128], strides = [1, 1]} : vector<8x512xf32> to vector<8x128xf32>
    %165 = arith.negf %164 : vector<8x128xf32>
    %166 = math.exp %165 : vector<8x128xf32>
    %cst_34 = arith.constant 1.000000e+00 : f32
    %167 = vector.broadcast %cst_34 : f32 to vector<8x128xf32>
    %168 = arith.addf %167, %166 : vector<8x128xf32>
    %169 = arith.divf %167, %168 : vector<8x128xf32>
    %170 = vector.extract_strided_slice %163 {offsets = [0, 128], sizes = [8, 128], strides = [1, 1]} : vector<8x512xf32> to vector<8x128xf32>
    %171 = arith.negf %170 : vector<8x128xf32>
    %172 = math.exp %171 : vector<8x128xf32>
    %cst_35 = arith.constant 1.000000e+00 : f32
    %173 = vector.broadcast %cst_35 : f32 to vector<8x128xf32>
    %174 = arith.addf %173, %172 : vector<8x128xf32>
    %175 = arith.divf %173, %174 : vector<8x128xf32>
    %176 = vector.extract_strided_slice %163 {offsets = [0, 256], sizes = [8, 128], strides = [1, 1]} : vector<8x512xf32> to vector<8x128xf32>
    %177 = math.tanh %176 : vector<8x128xf32>
    %178 = vector.extract_strided_slice %163 {offsets = [0, 384], sizes = [8, 128], strides = [1, 1]} : vector<8x512xf32> to vector<8x128xf32>
    %179 = arith.negf %178 : vector<8x128xf32>
    %180 = math.exp %179 : vector<8x128xf32>
    %cst_36 = arith.constant 1.000000e+00 : f32
    %181 = vector.broadcast %cst_36 : f32 to vector<8x128xf32>
    %182 = arith.addf %181, %180 : vector<8x128xf32>
    %183 = arith.divf %181, %182 : vector<8x128xf32>
    %184 = arith.mulf %175, %157 : vector<8x128xf32>
    %185 = arith.mulf %169, %177 : vector<8x128xf32>
    %186 = arith.addf %184, %185 : vector<8x128xf32>
    %187 = math.tanh %186 : vector<8x128xf32>
    %188 = arith.mulf %183, %187 : vector<8x128xf32>
    %189 = vector.extract_strided_slice %12 {offsets = [48, 0], sizes = [8, 512], strides = [1, 1]} : vector<64x512xf32> to vector<8x512xf32>
    %190 = arith.truncf %188 : vector<8x128xf32> to vector<8x128xbf16>
    %cst_37 = arith.constant dense<0.000000e+00> : vector<8x512xf32>
    %191 = tpu.matmul %190, %7, %cst_37 {dimension_numbers = #tpu.dot_dimension_numbers<[1], [0], [0], [1], [0, 0, 1, 1], [], []>} : vector<8x128xbf16>, vector<128x512xbf16>, vector<8x512xf32> -> vector<8x512xf32>
    %192 = arith.addf %189, %191 : vector<8x512xf32>
    %193 = vector.extract_strided_slice %192 {offsets = [0, 0], sizes = [8, 128], strides = [1, 1]} : vector<8x512xf32> to vector<8x128xf32>
    %194 = arith.negf %193 : vector<8x128xf32>
    %195 = math.exp %194 : vector<8x128xf32>
    %cst_38 = arith.constant 1.000000e+00 : f32
    %196 = vector.broadcast %cst_38 : f32 to vector<8x128xf32>
    %197 = arith.addf %196, %195 : vector<8x128xf32>
    %198 = arith.divf %196, %197 : vector<8x128xf32>
    %199 = vector.extract_strided_slice %192 {offsets = [0, 128], sizes = [8, 128], strides = [1, 1]} : vector<8x512xf32> to vector<8x128xf32>
    %200 = arith.negf %199 : vector<8x128xf32>
    %201 = math.exp %200 : vector<8x128xf32>
    %cst_39 = arith.constant 1.000000e+00 : f32
    %202 = vector.broadcast %cst_39 : f32 to vector<8x128xf32>
    %203 = arith.addf %202, %201 : vector<8x128xf32>
    %204 = arith.divf %202, %203 : vector<8x128xf32>
    %205 = vector.extract_strided_slice %192 {offsets = [0, 256], sizes = [8, 128], strides = [1, 1]} : vector<8x512xf32> to vector<8x128xf32>
    %206 = math.tanh %205 : vector<8x128xf32>
    %207 = vector.extract_strided_slice %192 {offsets = [0, 384], sizes = [8, 128], strides = [1, 1]} : vector<8x512xf32> to vector<8x128xf32>
    %208 = arith.negf %207 : vector<8x128xf32>
    %209 = math.exp %208 : vector<8x128xf32>
    %cst_40 = arith.constant 1.000000e+00 : f32
    %210 = vector.broadcast %cst_40 : f32 to vector<8x128xf32>
    %211 = arith.addf %210, %209 : vector<8x128xf32>
    %212 = arith.divf %210, %211 : vector<8x128xf32>
    %213 = arith.mulf %204, %186 : vector<8x128xf32>
    %214 = arith.mulf %198, %206 : vector<8x128xf32>
    %215 = arith.addf %213, %214 : vector<8x128xf32>
    %216 = math.tanh %215 : vector<8x128xf32>
    %217 = arith.mulf %212, %216 : vector<8x128xf32>
    %218 = vector.extract_strided_slice %12 {offsets = [56, 0], sizes = [8, 512], strides = [1, 1]} : vector<64x512xf32> to vector<8x512xf32>
    %219 = arith.truncf %217 : vector<8x128xf32> to vector<8x128xbf16>
    %cst_41 = arith.constant dense<0.000000e+00> : vector<8x512xf32>
    %220 = tpu.matmul %219, %7, %cst_41 {dimension_numbers = #tpu.dot_dimension_numbers<[1], [0], [0], [1], [0, 0, 1, 1], [], []>} : vector<8x128xbf16>, vector<128x512xbf16>, vector<8x512xf32> -> vector<8x512xf32>
    %221 = arith.addf %218, %220 : vector<8x512xf32>
    %222 = vector.extract_strided_slice %221 {offsets = [0, 0], sizes = [8, 128], strides = [1, 1]} : vector<8x512xf32> to vector<8x128xf32>
    %223 = arith.negf %222 : vector<8x128xf32>
    %224 = math.exp %223 : vector<8x128xf32>
    %cst_42 = arith.constant 1.000000e+00 : f32
    %225 = vector.broadcast %cst_42 : f32 to vector<8x128xf32>
    %226 = arith.addf %225, %224 : vector<8x128xf32>
    %227 = arith.divf %225, %226 : vector<8x128xf32>
    %228 = vector.extract_strided_slice %221 {offsets = [0, 128], sizes = [8, 128], strides = [1, 1]} : vector<8x512xf32> to vector<8x128xf32>
    %229 = arith.negf %228 : vector<8x128xf32>
    %230 = math.exp %229 : vector<8x128xf32>
    %cst_43 = arith.constant 1.000000e+00 : f32
    %231 = vector.broadcast %cst_43 : f32 to vector<8x128xf32>
    %232 = arith.addf %231, %230 : vector<8x128xf32>
    %233 = arith.divf %231, %232 : vector<8x128xf32>
    %234 = vector.extract_strided_slice %221 {offsets = [0, 256], sizes = [8, 128], strides = [1, 1]} : vector<8x512xf32> to vector<8x128xf32>
    %235 = math.tanh %234 : vector<8x128xf32>
    %236 = vector.extract_strided_slice %221 {offsets = [0, 384], sizes = [8, 128], strides = [1, 1]} : vector<8x512xf32> to vector<8x128xf32>
    %237 = arith.negf %236 : vector<8x128xf32>
    %238 = math.exp %237 : vector<8x128xf32>
    %cst_44 = arith.constant 1.000000e+00 : f32
    %239 = vector.broadcast %cst_44 : f32 to vector<8x128xf32>
    %240 = arith.addf %239, %238 : vector<8x128xf32>
    %241 = arith.divf %239, %240 : vector<8x128xf32>
    %242 = arith.mulf %233, %215 : vector<8x128xf32>
    %243 = arith.mulf %227, %235 : vector<8x128xf32>
    %244 = arith.addf %242, %243 : vector<8x128xf32>
    %245 = math.tanh %244 : vector<8x128xf32>
    %246 = arith.mulf %241, %245 : vector<8x128xf32>
    %c1_i32 = arith.constant 1 : i32
    %247 = arith.cmpi slt, %arg0, %c1_i32 : i32
    %248 = arith.extui %247 : i1 to i32
    %c0_i32_45 = arith.constant 0 : i32
    %249 = arith.cmpi ne, %248, %c0_i32_45 : i32
    scf.if %249 {
      %253 = tpu.concatenate %43, %72, %101, %130, %159, %188, %217, %246 in 0 : vector<8x128xf32>, vector<8x128xf32>, vector<8x128xf32>, vector<8x128xf32>, vector<8x128xf32>, vector<8x128xf32>, vector<8x128xf32>, vector<8x128xf32> -> vector<64x128xf32>
      %254 = arith.truncf %253 : vector<64x128xf32> to vector<64x128xbf16>
      %c0_48 = arith.constant 0 : index
      %c0_49 = arith.constant 0 : index
      %255 = vector.load %arg8[%c0_48, %c0_49] : memref<64x128xbf16, #tpu.memory_space<vmem>>, vector<64x128xbf16>
      tpu.vector_store %arg8[%c0_48, %c0_49], %254 {strides = array<i32>} : memref<64x128xbf16, #tpu.memory_space<vmem>>, vector<64x128xbf16>,
    } else {
    }
    %c1_i32_46 = arith.constant 1 : i32
    %250 = arith.cmpi eq, %arg0, %c1_i32_46 : i32
    %251 = arith.extui %250 : i1 to i32
    %c0_i32_47 = arith.constant 0 : i32
    %252 = arith.cmpi ne, %251, %c0_i32_47 : i32
    scf.if %252 {
      %253 = arith.truncf %246 : vector<8x128xf32> to vector<8x128xbf16>
      %c0_48 = arith.constant 0 : index
      %c0_49 = arith.constant 0 : index
      %254 = vector.load %arg5[%c0_48, %c0_49] : memref<128x128xbf16, #tpu.memory_space<vmem>>, vector<128x128xbf16>
      %cst_50 = arith.constant dense<0.000000e+00> : vector<8x128xf32>
      %255 = tpu.matmul %253, %254, %cst_50 {dimension_numbers = #tpu.dot_dimension_numbers<[1], [0], [0], [1], [0, 0, 1, 1], [], []>} : vector<8x128xbf16>, vector<128x128xbf16>, vector<8x128xf32> -> vector<8x128xf32>
      %c0_51 = arith.constant 0 : index
      %c0_52 = arith.constant 0 : index
      %256 = vector.load %arg6[%c0_51, %c0_52] : memref<1x128xf32, #tpu.memory_space<vmem>>, vector<1x128xf32>
      %257 = vector.broadcast %256 : vector<1x128xf32> to vector<8x128xf32>
      %258 = arith.addf %255, %257 : vector<8x128xf32>
      %c0_53 = arith.constant 0 : index
      %c0_54 = arith.constant 0 : index
      %259 = vector.load %arg7[%c0_53, %c0_54] : memref<8x128xf32, #tpu.memory_space<vmem>>, vector<8x128xf32>
      tpu.vector_store %arg7[%c0_53, %c0_54], %258 {strides = array<i32>} : memref<8x128xf32, #tpu.memory_space<vmem>>, vector<8x128xf32>,
    } else {
    }
    return
  }
  func.func @transform_0(%arg0: i32) -> (i32, i32) {
    %c0_i32 = arith.constant 0 : i32
    %c0_i32_0 = arith.constant 0 : i32
    %c0_i32_1 = arith.constant 0 : i32
    return %c0_i32, %c0_i32_0 : i32, i32
  }
  func.func @transform_1(%arg0: i32) -> (i32, i32, i32) {
    %c0_i32 = arith.constant 0 : i32
    %c0_i32_0 = arith.constant 0 : i32
    %c0_i32_1 = arith.constant 0 : i32
    return %arg0, %c0_i32, %c0_i32_0 : i32, i32, i32
  }
  func.func @transform_2(%arg0: i32) -> (i32, i32, i32) {
    %c0_i32 = arith.constant 0 : i32
    %c0_i32_0 = arith.constant 0 : i32
    %c0_i32_1 = arith.constant 0 : i32
    return %arg0, %c0_i32, %c0_i32_0 : i32, i32, i32
  }
  func.func @transform_3(%arg0: i32) -> (i32, i32, i32) {
    %c0_i32 = arith.constant 0 : i32
    %c0_i32_0 = arith.constant 0 : i32
    %c0_i32_1 = arith.constant 0 : i32
    return %arg0, %c0_i32, %c0_i32_0 : i32, i32, i32
  }
  func.func @transform_4(%arg0: i32) -> (i32, i32) {
    %c0_i32 = arith.constant 0 : i32
    %c0_i32_0 = arith.constant 0 : i32
    %c0_i32_1 = arith.constant 0 : i32
    return %c0_i32, %c0_i32_0 : i32, i32
  }
  func.func @transform_5(%arg0: i32) -> (i32, i32) {
    %c0_i32 = arith.constant 0 : i32
    %c0_i32_0 = arith.constant 0 : i32
    %c0_i32_1 = arith.constant 0 : i32
    return %c0_i32, %c0_i32_0 : i32, i32
  }
  func.func @transform_6(%arg0: i32) -> (i32, i32) {
    %c0_i32 = arith.constant 0 : i32
    %c0_i32_0 = arith.constant 0 : i32
    %c0_i32_1 = arith.constant 0 : i32
    return %c0_i32, %c0_i32_0 : i32, i32
  }
}

</mosaic_0001>

<bundles_post_ra>
// kernel: lstm_model_forward.1
= control target key start
LH: loop header
LB: loop body
LE: loop exit
PB: predicated region body
PF: predicated region fallthrough
CT: control target
= control target key end

     0   :  { %11 = vsyncpa [#allocation4], 0  ;;  %s3458_s0 = inlined_call_operand.vmem [shape: bf16[64,128], index: 0, kind: input, shape index: {}]   ;;  %s3459_s1 = inlined_call_operand.hbm [shape: bf16[2,128,512], index: 1, kind: input, shape index: {}]   ;;  %s3460_s2 = inlined_call_operand.hbm [shape: bf16[2,128,512], index: 2, kind: input, shape index: {}]   ;;  %s3461_s3 = inlined_call_operand.vmem [shape: f32[2,1,512], index: 3, kind: input, shape index: {}]   ;;  %s3462_s4 = inlined_call_operand.vmem [shape: bf16[128,128], index: 4, kind: input, shape index: {}]   ;;  %s3463_s5 = inlined_call_operand.vmem [shape: f32[1,128], index: 5, kind: input, shape index: {}]   ;;  %s3464_s6 = inlined_call_operand.vmem [shape: f32[8,128], index: 6, kind: output, shape index: {}]  }
   0x1   :  { %13 = vsyncpa [#allocation4 + $0x1], 0 }
   0x2   :  { %14 = vsyncpa [#allocation6], 0 }
   0x3   :  { %16 = vsyncpa [#allocation6 + $0x1], 0  ;;  %s2610_s21 = smov 0   ;;  %s2612_s22 = smov 0  }
   0x4   :  { %s2614_s23 = smov 0   ;;  %s2616_s24 = smov 0  }
   0x5 LB: > { %s2629_s25 = sadd.s32 4294967295, %s2566_s24   ;;  %s2632_s26 = sadd.s32 1, %s2566_s24   ;;  %s2566_s24 = sphi %s2616_s24, %s3519_s24   ;;  %s2562_s23 = sphi %s2614_s23, %s3518_s23   ;;  %s2558_s22 = sphi %s2612_s22, %s3517_s22   ;;  %s2554_s21 = sphi %s2610_s21, %s3516_s21  }
   0x6   : > { %s47_s27 = ssub.s32 %s2566_s24, %s2632_s26  ;;  %s50_s28 = sadd.s32 1, %s2562_s23 }
   0x7   : > { %p48_p0 = scmp.eq.s32.totalorder %s47_s27, 0  ;;  %p57_p1 = scmp.ne.s32.totalorder %s2562_s23, %s2558_s22 }
   0x8   : > { %p58_p2 = scmp.eq.s32.totalorder %s2566_s24, 0  ;;  %p63_p3 = scmp.ne.s32.totalorder %s2558_s22, %s2554_s21 }
   0x9   : > { %s2642_s29 = scalar_select %p48_p0, %s2562_s23, %s50_s28  }
   0xa   : > { %p59_p4 = por %p58_p2, %p57_p1  ;;  %p64_p5 = scmp.eq.s32.totalorder %s2629_s25, 0 }
   0xb   : > { %p2162_p6 = scmp.lt.s32.totalorder %s2566_s24, 2  ;;  %s2651_s7 = sand.u32 1, %s2562_s23  }
   0xc   : > { %p2646_p7 = por %p64_p5, %p63_p3  ;;  %s2004_s8 = sshll.u32 %s2651_s7, 8 }
   0xd   : > { %s2120_s9 = sshll.u32 %s2566_s24, 12  ;;  %s215_s13 = scalar_lea.vmem [#allocation3], %s2004_s8 }
   0xe   : > { %s3468_s30 = scalar_select %p2646_p7, 1, 0 }
   0xf   : > { %s2660_s12 = scalar_lea.hbm %s3459_s1, %s2120_s9  ;;  %s222_s14 = sshll.u32 %s215_s13, 4  ;;  %s2664_s14 = int_to_ptr.vmem [resolvable:$true] %s222_s14 }
  0x10   : > { %p2666_p8 = pnand %p2162_p6, %p59_p4  ;;  %s212_s16 = scalar_lea.sflag [#allocation4], %s2651_s7 }
  0x11   : > { %s2468_s17 = scalar_lea.hbm %s2660_s12, 4096  ;;  %s2473_s20 = scalar_lea.hbm %s3459_s1, 8192 }
  0x12   : > { %p2469_p10 = scmp.ne.s32.totalorder %s2660_s12, %s2468_s17  ;;  %p2470_p11 = pneg %p2666_p8 }
  0x13   : > { %p2474_p0 = scmp.lt.u32.totalorder %s2660_s12, %s3459_s1  ;;  %p2475_p1 = scmp.lt.u32.totalorder %s2473_s20, %s2468_s17 }
  0x14   : > { %p2471_p12 = pnand %p2470_p11, %p2469_p10  ;;  %p2477_p3 = scmp.lt.u32.totalorder %s2468_s17, %s2660_s12 }
  0x15   : > { %p2476_p2 = por %p2475_p1, %p2474_p0 }
  0x16   : > { %p2472_p13 = pneg %p2471_p12 }
  0x17   : > { %p2478_p4 = por %p2477_p3, %p2476_p2 }
  0x19   : > { %p2479_p5 = pnand %p2478_p4, %p2472_p13 }
  0x1b   : > { %2482 = shalt.err (!%p2479_p5)
}
  0x1c   : > { %s2483_s28 = scalar_lea.vmem %s2664_s14, 4096  ;;  %s2568_s10 = smov [#allocation3]  }
  0x1d   : > { %p2484_p6 = scmp.ne.s32.totalorder %s2664_s14, %s2483_s28  ;;  %s2488_s11 = sshll.u32 %s2568_s10, 4  ;;  %s2489_s11 = int_to_ptr.vmem [resolvable:$false] %s2488_s11 }
  0x1e   : > { %s2490_s13 = scalar_lea.vmem %s2489_s11, 8192  ;;  %p2491_p9 = scmp.lt.s32.totalorder %s2664_s14, %s2489_s11 }
  0x1f   : > { %p2486_p10 = pnand %p2484_p6, %p2470_p11  ;;  %p2492_p0 = scmp.lt.s32.totalorder %s2490_s13, %s2483_s28 }
  0x21   : > { %p2487_p12 = pneg %p2486_p10  ;;  %p2493_p1 = por %p2492_p0, %p2491_p9 }
  0x23   : > { %p2494_p2 = pnand %p2493_p1, %p2487_p12 }
  0x25   : > { %2497 = shalt.err (!%p2494_p2)
}
  0x26   : > { %s2569_s17 = smov 256   ;;  %s2570_s18 = smov 16  }
  0x27   : > { %2158 = dma.hbm_to_vmem [thread:$0]  (!%p2666_p8), %s2660_s12, 4096, %s2664_s14, %s212_s16, %s2569_s17, %s2569_s17, %s2570_s18  }
  0x28   : > { %p258_p9 = scmp.lt.s32.totalorder %s2566_s24, 3  ;;  %s2708_s21 = scalar_lea.hbm %s3460_s2, %s2120_s9 }
  0x29   : > { %p3470_p13 = scmp.ge.s32.totalorder %s2566_s24, 1  ;;  %s236_s28 = scalar_lea.vmem [#allocation5], %s2004_s8 }
  0x2a   : > { %s243_s10 = sshll.u32 %s236_s28, 4  ;;  %s233_s12 = scalar_lea.sflag [#allocation6], %s2651_s7  ;;  %s2718_s10 = int_to_ptr.vmem [resolvable:$true] %s243_s10 }
  0x2b   : > { %p2712_p3 = pnand %p3470_p13, %p258_p9  ;;  %s2498_s14 = scalar_lea.hbm %s2708_s21, 4096 }
  0x2c   : > { %p2499_p4 = scmp.ne.s32.totalorder %s2708_s21, %s2498_s14  ;;  %s2503_s16 = scalar_lea.hbm %s3460_s2, 8192 }
  0x2d   : > { %p2504_p10 = scmp.lt.u32.totalorder %s2708_s21, %s3460_s2  ;;  %p2505_p12 = scmp.lt.u32.totalorder %s2503_s16, %s2498_s14 }
  0x2e   : > { %p2501_p5 = pnand %p2499_p4, %p2470_p11  ;;  %p2507_p1 = scmp.lt.u32.totalorder %s2498_s14, %s2708_s21 }
  0x2f   : > { %p2506_p0 = por %p2505_p12, %p2504_p10 }
  0x30   : > { %p2502_p6 = pneg %p2501_p5 }
  0x31   : > { %p2508_p2 = por %p2507_p1, %p2506_p0 }
  0x33   : > { %p2509_p9 = pnand %p2508_p2, %p2502_p6 }
  0x35   : > { %2512 = shalt.err (!%p2509_p9)
}
  0x36   : > { %s2513_s8 = scalar_lea.vmem %s2718_s10, 4096  ;;  %s2571_s19 = smov [#allocation5]  }
  0x37   : > { %p2514_p13 = scmp.ne.s32.totalorder %s2718_s10, %s2513_s8  ;;  %s2518_s20 = sshll.u32 %s2571_s19, 4  ;;  %s2519_s20 = int_to_ptr.vmem [resolvable:$false] %s2518_s20 }
  0x38   : > { %s2520_s28 = scalar_lea.vmem %s2519_s20, 8192  ;;  %p2521_p7 = scmp.lt.s32.totalorder %s2718_s10, %s2519_s20 }
  0x39   : > { %p2516_p4 = pnand %p2514_p13, %p2470_p11  ;;  %p2522_p10 = scmp.lt.s32.totalorder %s2520_s28, %s2513_s8 }
  0x3b   : > { %p2517_p5 = pneg %p2516_p4  ;;  %p2523_p12 = por %p2522_p10, %p2521_p7 }
  0x3d   : > { %p2524_p0 = pnand %p2523_p12, %p2517_p5 }
  0x3f   : > { %2527 = shalt.err (!%p2524_p0)
}
  0x40   : > { %2161 = dma.hbm_to_vmem [thread:$0]  (!%p2666_p8), %s2708_s21, 4096, %s2718_s10, %s233_s12, %s2569_s17, %s2569_s17, %s2570_s18  }
  0x41   : > { %262 = sbr.rel (%p2712_p3) target bundleno = 2484 (0x9b4), region = 44 }
  0x48   : > { %s264_s14 = sand.u32 1, %s2558_s22   ;;  %p3472_p7 = scmp.ne.s32.totalorder %s3468_s30, 0 }
  0x49   : > { %s2011_s24 = sshll.u32 %s264_s14, 8  ;;  %s265_s9 = scalar_lea.sflag [#allocation4], %s264_s14 }
  0x4a   : > { %s2752_s16 = scalar_lea.vmem [#allocation3], %s2011_s24 }
  0x4b   : > { %2545 = dma.done.wait (%p3472_p7), %s265_s9, 4096  }
  0x4c   : > { %2547 = vsyncadd (%p3472_p7), %s265_s9, 4294963200  ;;  %s274_s7 = scalar_lea.sflag [#allocation6], %s264_s14  ;;  %s2758_s15 = scalar_lea.vmem [#allocation5], %s2011_s24 }
  0x4d   : > { %2549 = dma.done.wait (%p3472_p7), %s274_s7, 4096  }
  0x4e   : > { %2551 = vsyncadd (%p3472_p7), %s274_s7, 4294963200  ;;  %p310_p8 = scmp.lt.s32.totalorder %s2629_s25, 1  ;;  %p2014_p11 = scmp.ne.s32.totalorder %s2629_s25, 0 }
  0x4f   : > { %v2200_v0 = vld [vmem:[%s3458_s0] sm:$0xff] (!%p2014_p11)   ;;  %v2201_v1 = vld [vmem:[%s3458_s0 + $0x8] sm:$0xff] (!%p2014_p11)   ;;  %v2202_v2 = vld [vmem:[%s3458_s0 + $0x10] sm:$0xff] (!%p2014_p11)  }
  0x50   : > { %s311_s17 = scalar_select %p310_p8, %s2629_s25, 1 }
  0x51   : > { %318 = sbr.rel (%p2014_p11) target bundleno = 88 (0x58), region = 56  ;;  %351 = vst [vmem:[#allocation2] sm:$0xff] (!%p2014_p11), %v2200_v0  ;;  %352 = vst [vmem:[#allocation2 + $0x8] sm:$0xff] (!%p2014_p11), %v2201_v1  ;;  %v2203_v3 = vld [vmem:[%s3458_s0 + $0x18] sm:$0xff] (!%p2014_p11)  }
  0x52   : > { %s2013_s18 = sshll.u32 %s311_s17, 2  ;;  %353 = vst [vmem:[#allocation2 + $0x10] sm:$0xff] (!%p2014_p11), %v2202_v2  ;;  %354 = vst [vmem:[#allocation2 + $0x18] sm:$0xff] (!%p2014_p11), %v2203_v3 }
  0x53   : > { %s2769_s10 = scalar_lea.vmem %s3461_s3, %s2013_s18 }
  0x58 PF: > { %v2204_v4 = vld [vmem:[%s2752_s16 + $0x4] ss:$16 sps:$4 sm:$0xff]   ;;  %v2206_v5 = vld [vmem:[%s2752_s16 + $0xc] ss:$16 sps:$4 sm:$0xff]   ;;  %v3466_v6 = vmov 0   ;;  %p2107_p3 = scmp.ge.s32.totalorder %s2629_s25, 1 }
  0x59   : > { %637 = vmatprep.mubr.bf16.mxu0 %v3466_v6  ;;  %710 = vmatprep.mubr.bf16.mxu1 %v3466_v6  ;;  %v2208_v7 = vld [vmem:[%s2752_s16] ss:$16 sps:$4 sm:$0xff]   ;;  %v2209_v8 = vld [vmem:[%s2752_s16 + $0x8] ss:$16 sps:$4 sm:$0xff]   ;;  %v2210_v9 = vld [vmem:[%s2752_s16 + $0x24] ss:$16 sps:$4 sm:$0xff]  }
  0x5a   : > { %605 = vmatprep.subr.bf16.mxu0 %v2204_v4  ;;  %678 = vmatprep.subr.bf16.mxu1 %v2206_v5  ;;  %v2212_v10 = vld [vmem:[%s2752_s16 + $0x2c] ss:$16 sps:$4 sm:$0xff]   ;;  %v2214_v11 = vld [vmem:[%s2752_s16 + $0x20] ss:$16 sps:$4 sm:$0xff]   ;;  %v2215_v12 = vld [vmem:[%s2752_s16 + $0x28] ss:$16 sps:$4 sm:$0xff]  }
  0x5b   : > { %606 = vmatpush1.bf16.msra.mxu0 %v2208_v7  ;;  %679 = vmatpush1.bf16.msra.mxu1 %v2209_v8  ;;  %v2216_v13 = vld [vmem:[%s2752_s16 + $0x44] ss:$16 sps:$4 sm:$0xff]   ;;  %v2218_v14 = vld [vmem:[%s2752_s16 + $0x4c] ss:$16 sps:$4 sm:$0xff]   ;;  %v2220_v15 = vld [vmem:[%s2752_s16 + $0x40] ss:$16 sps:$4 sm:$0xff]  }
  0x5c   : > { %607 = vmatprep.subr.bf16.mxu0 %v2210_v9  ;;  %680 = vmatprep.subr.bf16.mxu1 %v2212_v10  ;;  %v2221_v16 = vld [vmem:[%s2752_s16 + $0x48] ss:$16 sps:$4 sm:$0xff]   ;;  %v2222_v17 = vld [vmem:[%s2752_s16 + $0x64] ss:$16 sps:$4 sm:$0xff]   ;;  %v2224_v18 = vld [vmem:[%s2752_s16 + $0x6c] ss:$16 sps:$4 sm:$0xff]   ;;  %v425_v10 = vlaneseq }
  0x5d   : > { %v2226_v19 = vld [vmem:[%s2752_s16 + $0x60] ss:$16 sps:$4 sm:$0xff]   ;;  %v2227_v20 = vld [vmem:[%s2752_s16 + $0x68] ss:$16 sps:$4 sm:$0xff]   ;;  %v2228_v21 = vld [vmem:[%s2752_s16 + $0x84] ss:$16 sps:$4 sm:$0xff]  }
  0x5e   : > { %v2230_v22 = vld [vmem:[%s2752_s16 + $0x8c] ss:$16 sps:$4 sm:$0xff]   ;;  %v2232_v23 = vld [vmem:[%s2752_s16 + $0x80] ss:$16 sps:$4 sm:$0xff]   ;;  %v2233_v24 = vld [vmem:[%s2752_s16 + $0x88] ss:$16 sps:$4 sm:$0xff]  }
  0x5f   : > { %608 = vmatpush1.bf16.msra.mxu0 %v2214_v11  ;;  %681 = vmatpush1.bf16.msra.mxu1 %v2215_v12  ;;  %v2234_v25 = vld [vmem:[%s2752_s16 + $0xa4] ss:$16 sps:$4 sm:$0xff]   ;;  %v2236_v26 = vld [vmem:[%s2752_s16 + $0xac] ss:$16 sps:$4 sm:$0xff]   ;;  %v2238_v27 = vld [vmem:[%s2752_s16 + $0xa0] ss:$16 sps:$4 sm:$0xff]  }
  0x60   : > { %609 = vmatprep.subr.bf16.mxu0 %v2216_v13  ;;  %682 = vmatprep.subr.bf16.mxu1 %v2218_v14  ;;  %v2239_v28 = vld [vmem:[%s2752_s16 + $0xa8] ss:$16 sps:$4 sm:$0xff]   ;;  %v2240_v29 = vld [vmem:[%s2752_s16 + $0xc4] ss:$16 sps:$4 sm:$0xff]   ;;  %v2242_v30 = vld [vmem:[%s2752_s16 + $0xcc] ss:$16 sps:$4 sm:$0xff]  }
  0x61   : > { %v2244_v31 = vld [vmem:[%s2752_s16 + $0xc0] ss:$16 sps:$4 sm:$0xff]   ;;  %v2245_v32 = vld [vmem:[%s2752_s16 + $0xc8] ss:$16 sps:$4 sm:$0xff]   ;;  %v2246_v33 = vld [vmem:[%s2752_s16 + $0xe4] ss:$16 sps:$4 sm:$0xff]  }
  0x62   : > { %v2248_v34 = vld [vmem:[%s2752_s16 + $0xec] ss:$16 sps:$4 sm:$0xff]   ;;  %v2250_v35 = vld [vmem:[%s2752_s16 + $0xe0] ss:$16 sps:$4 sm:$0xff]   ;;  %v2251_v36 = vld [vmem:[%s2752_s16 + $0xe8] ss:$16 sps:$4 sm:$0xff]  }
  0x63   : > { %610 = vmatpush1.bf16.msra.mxu0 %v2220_v15  ;;  %683 = vmatpush1.bf16.msra.mxu1 %v2221_v16  ;;  %v2819_v37 = vld [vmem:[%s2758_s15 + $0x4] ss:$16 sps:$4 sm:$0xff]   ;;  %v2822_v38 = vld [vmem:[%s2758_s15 + $0xc] ss:$16 sps:$4 sm:$0xff]   ;;  %v2825_v40 = vld [vmem:[%s2758_s15] ss:$16 sps:$4 sm:$0xff]  }
  0x64   : > { %611 = vmatprep.subr.bf16.mxu0 %v2222_v17  ;;  %684 = vmatprep.subr.bf16.mxu1 %v2224_v18  ;;  %v355_v39 = vld [vmem:[#allocation2] sm:$0xff]  ;;  %v2828_v41 = vld [vmem:[%s2758_s15 + $0x8] ss:$16 sps:$4 sm:$0xff]   ;;  %v2836_v43 = vld [vmem:[%s2758_s15 + $0x2c] ss:$16 sps:$4 sm:$0xff]   ;;  %v426_v11 = vshrl.u32 %v425_v10, 7 }
  0x65   : > { %v2831_v42 = vld [vmem:[%s2758_s15 + $0x24] ss:$16 sps:$4 sm:$0xff]   ;;  %v2839_v44 = vld [vmem:[%s2758_s15 + $0x20] ss:$16 sps:$4 sm:$0xff]   ;;  %v2844_v45 = vld [vmem:[%s2758_s15 + $0x28] ss:$16 sps:$4 sm:$0xff]  }
  0x66   : > { %v2849_v46 = vld [vmem:[%s2758_s15 + $0x44] ss:$16 sps:$4 sm:$0xff]   ;;  %v2852_v47 = vld [vmem:[%s2758_s15 + $0x4c] ss:$16 sps:$4 sm:$0xff]   ;;  %v2857_v49 = vld [vmem:[%s2758_s15 + $0x40] ss:$16 sps:$4 sm:$0xff]  }
  0x67   : > { %612 = vmatpush1.bf16.msra.mxu0 %v2226_v19  ;;  %685 = vmatpush1.bf16.msra.mxu1 %v2227_v20  ;;  %v356_v48 = vld [vmem:[#allocation2 + $0x8] sm:$0xff]  ;;  %v2865_v51 = vld [vmem:[%s2758_s15 + $0x64] ss:$16 sps:$4 sm:$0xff]   ;;  %v2875_v53 = vld [vmem:[%s2758_s15 + $0x60] ss:$16 sps:$4 sm:$0xff]   ;;  %v435_v12 = vsub.s32 2, %v426_v11 }
  0x68   : > { %613 = vmatprep.subr.bf16.mxu0 %v2228_v21  ;;  %686 = vmatprep.subr.bf16.mxu1 %v2230_v22  ;;  %v2862_v50 = vld [vmem:[%s2758_s15 + $0x48] ss:$16 sps:$4 sm:$0xff]   ;;  %v2870_v52 = vld [vmem:[%s2758_s15 + $0x6c] ss:$16 sps:$4 sm:$0xff]   ;;  %v2883_v55 = vld [vmem:[%s2758_s15 + $0x84] ss:$16 sps:$4 sm:$0xff]  }
  0x69   : > { %v2878_v54 = vld [vmem:[%s2758_s15 + $0x68] ss:$16 sps:$4 sm:$0xff]   ;;  %v2886_v56 = vld [vmem:[%s2758_s15 + $0x8c] ss:$16 sps:$4 sm:$0xff]   ;;  %v357_v57 = vld [vmem:[#allocation2 + $0x10] sm:$0xff]  ;;  %v439_v13 = vsub.s32 3, %v426_v11 }
  0x6a   : > { %v2893_v58 = vld [vmem:[%s2758_s15 + $0x80] ss:$16 sps:$4 sm:$0xff]   ;;  %v2896_v59 = vld [vmem:[%s2758_s15 + $0x88] ss:$16 sps:$4 sm:$0xff]   ;;  %v2901_v60 = vld [vmem:[%s2758_s15 + $0xa4] ss:$16 sps:$4 sm:$0xff]  }
  0x6b   : > { %614 = vmatpush1.bf16.msra.mxu0 %v2232_v23  ;;  %687 = vmatpush1.bf16.msra.mxu1 %v2233_v24  ;;  %v2904_v61 = vld [vmem:[%s2758_s15 + $0xac] ss:$16 sps:$4 sm:$0xff]   ;;  %v2909_v62 = vld [vmem:[%s2758_s15 + $0xa0] ss:$16 sps:$4 sm:$0xff]   ;;  %v2912_v63 = vld [vmem:[%s2758_s15 + $0xa8] ss:$16 sps:$4 sm:$0xff]  }
  0x6c   : > { %615 = vmatprep.subr.bf16.mxu0 %v2234_v25  ;;  %688 = vmatprep.subr.bf16.mxu1 %v2236_v26  ;;  %v2917_v0 = vld [vmem:[%s2758_s15 + $0xc4] ss:$16 sps:$4 sm:$0xff]   ;;  %v2920_v1 = vld [vmem:[%s2758_s15 + $0xcc] ss:$16 sps:$4 sm:$0xff]   ;;  %v2927_v3 = vld [vmem:[%s2758_s15 + $0xc0] ss:$16 sps:$4 sm:$0xff]  }
  0x6d   : > { %v358_v2 = vld [vmem:[#allocation2 + $0x18] sm:$0xff]  ;;  %v2935_v5 = vld [vmem:[%s2758_s15 + $0xe4] ss:$16 sps:$4 sm:$0xff]   ;;  %v2943_v8 = vld [vmem:[%s2758_s15 + $0xe0] ss:$16 sps:$4 sm:$0xff]   ;;  %v427_v14 = vsub.s32 0, %v426_v11 }
  0x6e   : > { %v2930_v4 = vld [vmem:[%s2758_s15 + $0xc8] ss:$16 sps:$4 sm:$0xff]   ;;  %v2938_v7 = vld [vmem:[%s2758_s15 + $0xec] ss:$16 sps:$4 sm:$0xff]   ;;  %v423_v15 = vld [vmem:[%s2769_s10] sm:$0xf] }
  0x6f   : > { %616 = vmatpush1.bf16.msra.mxu0 %v2238_v27  ;;  %689 = vmatpush1.bf16.msra.mxu1 %v2239_v28  ;;  %v2946_v9 = vld [vmem:[%s2758_s15 + $0xe8] ss:$16 sps:$4 sm:$0xff]   ;;  %v431_v16 = vsub.s32 1, %v426_v11  ;;  %v2993_v17 = vrot.slane %v423_v15, %v435_v12  ;;  %v2999_v20 = vrot.slane %v423_v15, %v439_v13  ;;  %v428_v21 = vrot.slane %v423_v15, %v427_v14 }
  0x70   : > { %617 = vmatprep.subr.bf16.mxu0 %v2240_v29  ;;  %690 = vmatprep.subr.bf16.mxu1 %v2242_v30 }
  0x71   : > { %v432_v24 = vrot.slane %v423_v15, %v431_v16 }
  0x73   : > { %618 = vmatpush1.bf16.msra.mxu0 %v2244_v31  ;;  %691 = vmatpush1.bf16.msra.mxu1 %v2245_v32 }
  0x74   : > { %619 = vmatprep.subr.bf16.mxu0 %v2246_v33  ;;  %692 = vmatprep.subr.bf16.mxu1 %v2248_v34 }
  0x77   : > { %620 = vmatpush1.bf16.msra.mxu0 %v2250_v35  ;;  %693 = vmatpush1.bf16.msra.mxu1 %v2251_v36 }
  0x78   : > { %911 = vmatprep.subr.bf16.mxu0 %v2819_v37  ;;  %952 = vmatprep.subr.bf16.mxu1 %v2822_v38 }
  0x7a   : > { %638 = vmatmul.mubr.bf16.vlgmr.msra.gmra.mrb[0].mxu0 %v355_v39  ;;  %711 = vmatmul.mubr.bf16.vlgmr.msra.gmra.mrb[0].mxu1 %v355_v39 }
  0x7b   : > { %912 = vmatpush1.bf16.msra.mxu0 %v2825_v40  ;;  %953 = vmatpush1.bf16.msra.mxu1 %v2828_v41 }
  0x7c   : > { %913 = vmatprep.subr.bf16.mxu0 %v2831_v42  ;;  %954 = vmatprep.subr.bf16.mxu1 %v2836_v43 }
  0x7d   : > { %647 = vmatprep.mubr.bf16.mxu0 %v3466_v6  ;;  %720 = vmatprep.mubr.bf16.mxu1 %v3466_v6 }
  0x7f   : > { %914 = vmatpush1.bf16.msra.mxu0 %v2839_v44  ;;  %955 = vmatpush1.bf16.msra.mxu1 %v2844_v45 }
  0x80   : > { %915 = vmatprep.subr.bf16.mxu0 %v2849_v46  ;;  %956 = vmatprep.subr.bf16.mxu1 %v2852_v47 }
  0x82   : > { %648 = vmatmul.mubr.bf16.gmra.mrb[4].mxu0 %v356_v48  ;;  %721 = vmatmul.mubr.bf16.gmra.mrb[4].mxu1 %v356_v48 }
  0x83   : > { %916 = vmatpush1.bf16.msra.mxu0 %v2857_v49  ;;  %957 = vmatpush1.bf16.msra.mxu1 %v2862_v50 }
  0x84   : > { %917 = vmatprep.subr.bf16.mxu0 %v2865_v51  ;;  %958 = vmatprep.subr.bf16.mxu1 %v2870_v52 }
  0x85   : > { %657 = vmatprep.mubr.bf16.mxu0 %v3466_v6  ;;  %730 = vmatprep.mubr.bf16.mxu1 %v3466_v6 }
  0x87   : > { %918 = vmatpush1.bf16.msra.mxu0 %v2875_v53  ;;  %959 = vmatpush1.bf16.msra.mxu1 %v2878_v54 }
  0x88   : > { %919 = vmatprep.subr.bf16.mxu0 %v2883_v55  ;;  %960 = vmatprep.subr.bf16.mxu1 %v2886_v56 }
  0x8a   : > { %658 = vmatmul.mubr.bf16.gmra.mrb[8].mxu0 %v357_v57  ;;  %731 = vmatmul.mubr.bf16.gmra.mrb[8].mxu1 %v357_v57 }
  0x8b   : > { %920 = vmatpush1.bf16.msra.mxu0 %v2893_v58  ;;  %961 = vmatpush1.bf16.msra.mxu1 %v2896_v59 }
  0x8c   : > { %921 = vmatprep.subr.bf16.mxu0 %v2901_v60  ;;  %962 = vmatprep.subr.bf16.mxu1 %v2904_v61 }
  0x8d   : > { %667 = vmatprep.mubr.bf16.mxu0 %v3466_v6  ;;  %740 = vmatprep.mubr.bf16.mxu1 %v3466_v6 }
  0x8f   : > { %922 = vmatpush1.bf16.msra.mxu0 %v2909_v62  ;;  %963 = vmatpush1.bf16.msra.mxu1 %v2912_v63 }
  0x90   : > { %923 = vmatprep.subr.bf16.mxu0 %v2917_v0  ;;  %964 = vmatprep.subr.bf16.mxu1 %v2920_v1 }
  0x92   : > { %668 = vmatmul.mubr.bf16.gmra.mrb[12].mxu0 %v358_v2  ;;  %741 = vmatmul.mubr.bf16.gmra.mrb[12].mxu1 %v358_v2 }
  0x93   : > { %924 = vmatpush1.bf16.msra.mxu0 %v2927_v3  ;;  %965 = vmatpush1.bf16.msra.mxu1 %v2930_v4 }
  0x94   : > { %925 = vmatprep.subr.bf16.mxu0 %v2935_v5  ;;  %966 = vmatprep.subr.bf16.mxu1 %v2938_v7 }
  0x95   : > { %943 = vmatprep.mubr.bf16.mxu0 %v3466_v6  ;;  %984 = vmatprep.mubr.bf16.mxu1 %v3466_v6 }
  0x97   : > { %926 = vmatpush1.bf16.msra.mxu0 %v2943_v8  ;;  %967 = vmatpush1.bf16.msra.mxu1 %v2946_v9 }
  0x98   : > { %1022 = vmatprep.subr.bf16.mxu0 %v2819_v37  ;;  %1063 = vmatprep.subr.bf16.mxu1 %v2822_v38 }
  0x9a   : > { %944 = vmatmul.mubr.bf16.vlgmr.msra.gmra.mrb[16].mxu0 %v3466_v6  ;;  %985 = vmatmul.mubr.bf16.vlgmr.msra.gmra.mrb[16].mxu1 %v3466_v6 }
  0x9b   : > { %1023 = vmatpush1.bf16.msra.mxu0 %v2825_v40  ;;  %1064 = vmatpush1.bf16.msra.mxu1 %v2828_v41 }
  0x9c   : > { %1024 = vmatprep.subr.bf16.mxu0 %v2831_v42  ;;  %1065 = vmatprep.subr.bf16.mxu1 %v2836_v43 }
  0x9d   : > { %1054 = vmatprep.mubr.bf16.mxu0 %v3466_v6  ;;  %1095 = vmatprep.mubr.bf16.mxu1 %v3466_v6 }
  0x9f   : > { %1025 = vmatpush1.bf16.msra.mxu0 %v2839_v44  ;;  %1066 = vmatpush1.bf16.msra.mxu1 %v2844_v45 }
  0xa0   : > { %1026 = vmatprep.subr.bf16.mxu0 %v2849_v46  ;;  %1067 = vmatprep.subr.bf16.mxu1 %v2852_v47 }
  0xa3   : > { %1027 = vmatpush1.bf16.msra.mxu0 %v2857_v49  ;;  %1068 = vmatpush1.bf16.msra.mxu1 %v2862_v50 }
  0xa4   : > { %1028 = vmatprep.subr.bf16.mxu0 %v2865_v51  ;;  %1069 = vmatprep.subr.bf16.mxu1 %v2870_v52 }
  0xa7   : > { %1029 = vmatpush1.bf16.msra.mxu0 %v2875_v53  ;;  %1070 = vmatpush1.bf16.msra.mxu1 %v2878_v54 }
  0xa8   : > { %1030 = vmatprep.subr.bf16.mxu0 %v2883_v55  ;;  %1071 = vmatprep.subr.bf16.mxu1 %v2886_v56 }
  0xab   : > { %1031 = vmatpush1.bf16.msra.mxu0 %v2893_v58  ;;  %1072 = vmatpush1.bf16.msra.mxu1 %v2896_v59 }
  0xac   : > { %1032 = vmatprep.subr.bf16.mxu0 %v2901_v60  ;;  %1073 = vmatprep.subr.bf16.mxu1 %v2904_v61 }
  0xaf   : > { %1033 = vmatpush1.bf16.msra.mxu0 %v2909_v62  ;;  %1074 = vmatpush1.bf16.msra.mxu1 %v2912_v63 }
  0xb0   : > { %1034 = vmatprep.subr.bf16.mxu0 %v2917_v0  ;;  %1075 = vmatprep.subr.bf16.mxu1 %v2920_v1 }
  0xb3   : > { %1035 = vmatpush1.bf16.msra.mxu0 %v2927_v3  ;;  %1076 = vmatpush1.bf16.msra.mxu1 %v2930_v4 }
  0xb4   : > { %1036 = vmatprep.subr.bf16.mxu0 %v2935_v5  ;;  %1077 = vmatprep.subr.bf16.mxu1 %v2938_v7 }
  0xb7   : > { %1037 = vmatpush1.bf16.msra.mxu0 %v2943_v8  ;;  %1078 = vmatpush1.bf16.msra.mxu1 %v2946_v9 }
  0xb8   : > { %1133 = vmatprep.subr.bf16.mxu0 %v2819_v37  ;;  %1174 = vmatprep.subr.bf16.mxu1 %v2822_v38 }
 0x14d   : > { %v2995_v18 = vpop.f32.mrb[0].mxu0  ;;  %v2997_v19 = vpop.f32.mrb[0].mxu1 }
 0x14e   : > { %v641_v22 = vpop.f32.mrb[1].mxu0  ;;  %v714_v23 = vpop.f32.mrb[1].mxu1 }
 0x14f   : > { %v643_v25 = vpop.f32.mrb[2].mxu0  ;;  %v716_v26 = vpop.f32.mrb[2].mxu1 }
 0x150   : > { %v3001_v27 = vadd.f32 %v643_v25, %v428_v21  ;;  %v645_v28 = vpop.f32.mrb[3].mxu0  ;;  %v3004_v29 = vadd.f32 %v716_v26, %v2993_v17  ;;  %v718_v30 = vpop.f32.mrb[3].mxu1 }
 0x151   : > { %v3006_v31 = vadd.f32 %v645_v28, %v432_v24  ;;  %v3009_v32 = vadd.f32 %v718_v30, %v2999_v20 }
 0x155   : > { %v649_v33 = vpop.f32.mrb[4].mxu0  ;;  %v722_v34 = vpop.f32.mrb[4].mxu1 }
 0x156   : > { %v3011_v35 = vadd.f32 %v649_v33, %v428_v21  ;;  %v651_v36 = vpop.f32.mrb[5].mxu0  ;;  %v3014_v39 = vadd.f32 %v722_v34, %v2993_v17  ;;  %v724_v48 = vpop.f32.mrb[5].mxu1 }
 0x157   : > { %v3016_v57 = vadd.f32 %v651_v36, %v432_v24  ;;  %v653_v2 = vpop.f32.mrb[6].mxu0  ;;  %v3019_v10 = vadd.f32 %v724_v48, %v2999_v20  ;;  %v726_v11 = vpop.f32.mrb[6].mxu1 }
 0x158   : > { %v3021_v12 = vadd.f32 %v653_v2, %v428_v21  ;;  %v655_v13 = vpop.f32.mrb[7].mxu0  ;;  %v3024_v14 = vadd.f32 %v726_v11, %v2993_v17  ;;  %v728_v15 = vpop.f32.mrb[7].mxu1 }
 0x159   : > { %3473 = vst [vmem:[#allocation9_spill] sm:$0xff] %v3019_v10  ;;  %v3026_v16 = vadd.f32 %v655_v13, %v432_v24  ;;  %v3029_v25 = vadd.f32 %v728_v15, %v2999_v20 }
 0x15a   : > { %3474 = vst [vmem:[#allocation10_spill] sm:$0xff] %v3021_v12  ;;  %3475 = vst [vmem:[#allocation11_spill] sm:$0xff] %v3024_v14 }
 0x15b   : > { %3476 = vst [vmem:[#allocation12_spill] sm:$0xff] %v3026_v16  ;;  %3477 = vst [vmem:[#allocation13_spill] sm:$0xff] %v3029_v25 }
 0x15d   : > { %v659_v26 = vpop.f32.mrb[8].mxu0  ;;  %v732_v28 = vpop.f32.mrb[8].mxu1 }
 0x15e   : > { %v3031_v30 = vadd.f32 %v659_v26, %v428_v21  ;;  %v661_v33 = vpop.f32.mrb[9].mxu0  ;;  %v3034_v34 = vadd.f32 %v732_v28, %v2993_v17  ;;  %v734_v36 = vpop.f32.mrb[9].mxu1 }
 0x15f   : > { %v3036_v48 = vadd.f32 %v661_v33, %v432_v24  ;;  %v663_v2 = vpop.f32.mrb[10].mxu0  ;;  %v3039_v11 = vadd.f32 %v734_v36, %v2999_v20  ;;  %v736_v13 = vpop.f32.mrb[10].mxu1 }
 0x160   : > { %3478 = vst [vmem:[#allocation14_spill] sm:$0xff] %v3031_v30  ;;  %3479 = vst [vmem:[#allocation15_spill] sm:$0xff] %v3034_v34  ;;  %v3041_v6 = vadd.f32 %v663_v2, %v428_v21  ;;  %v665_v15 = vpop.f32.mrb[11].mxu0  ;;  %v3044_v25 = vadd.f32 %v736_v13, %v2993_v17  ;;  %v738_v26 = vpop.f32.mrb[11].mxu1 }
 0x161   : > { %3480 = vst [vmem:[#allocation16_spill] sm:$0xff] %v3036_v48  ;;  %3481 = vst [vmem:[#allocation17_spill] sm:$0xff] %v3039_v11  ;;  %v3046_v30 = vadd.f32 %v665_v15, %v432_v24  ;;  %v3049_v28 = vadd.f32 %v738_v26, %v2999_v20 }
 0x162   : > { %3482 = vst [vmem:[#allocation18_spill] sm:$0xff] %v3041_v6  ;;  %3483 = vst [vmem:[#allocation19_spill] sm:$0xff] %v3044_v25 }
 0x163   : > { %3484 = vst [vmem:[#allocation20_spill] sm:$0xff] %v3046_v30  ;;  %3485 = vst [vmem:[#allocation21_spill] sm:$0xff] %v3049_v28 }
 0x165   : > { %v669_v34 = vpop.f32.mrb[12].mxu0  ;;  %v742_v33 = vpop.f32.mrb[12].mxu1 }
 0x166   : > { %v3051_v48 = vadd.f32 %v669_v34, %v428_v21  ;;  %v671_v16 = vpop.f32.mrb[13].mxu0  ;;  %v3054_v36 = vadd.f32 %v742_v33, %v2993_v17  ;;  %v744_v2 = vpop.f32.mrb[13].mxu1 }
 0x167   : > { %v3056_v6 = vadd.f32 %v671_v16, %v432_v24  ;;  %v673_v11 = vpop.f32.mrb[14].mxu0  ;;  %v3059_v13 = vadd.f32 %v744_v2, %v2999_v20  ;;  %v746_v15 = vpop.f32.mrb[14].mxu1  ;;  %v640_v16 = vadd.f32 %v2995_v18, %v428_v21  ;;  %v642_v2 = vadd.f32 %v641_v22, %v432_v24 }
 0x168   : > { %3486 = vst [vmem:[#allocation22_spill] sm:$0xff] %v3051_v48  ;;  %3487 = vst [vmem:[#allocation23_spill] sm:$0xff] %v3054_v36  ;;  %v3061_v30 = vadd.f32 %v673_v11, %v428_v21  ;;  %v675_v26 = vpop.f32.mrb[15].mxu0  ;;  %v3064_v28 = vadd.f32 %v746_v15, %v2993_v17  ;;  %v748_v34 = vpop.f32.mrb[15].mxu1 }
 0x169   : > { %3488 = vst [vmem:[#allocation24_spill] sm:$0xff] %v3056_v6  ;;  %3489 = vst [vmem:[#allocation25_spill] sm:$0xff] %v3059_v13  ;;  %v3066_v48 = vadd.f32 %v675_v26, %v432_v24  ;;  %v3069_v33 = vadd.f32 %v748_v34, %v2999_v20  ;;  %v713_v6 = vadd.f32 %v2997_v19, %v2993_v17 }
 0x16a   : > { %3490 = vst [vmem:[#allocation26_spill] sm:$0xff] %v3061_v30  ;;  %3491 = vst [vmem:[#allocation27_spill] sm:$0xff] %v3064_v28  ;;  %v715_v13 = vadd.f32 %v714_v23, %v2999_v20 }
 0x16b   : > { %3492 = vst [vmem:[#allocation28_spill] sm:$0xff] %v3066_v48  ;;  %3493 = vst [vmem:[#allocation29_spill] sm:$0xff] %v3069_v33 }
 0x16d   : > { %v945_v11 = vpop.f32.mrb[16].mxu0  ;;  %v986_v30 = vpop.f32.mrb[16].mxu1 }
 0x16e   : > { %v993_v36 = vadd.f32 %v945_v11, %v640_v16  ;;  %v995_v25 = vadd.f32 %v986_v30, %v713_v6  ;;  %v947_v15 = vpop.f32.mrb[17].mxu0  ;;  %v988_v28 = vpop.f32.mrb[17].mxu1 }
 0x16f   : > { %v994_v14 = vadd.f32 %v947_v15, %v642_v2  ;;  %v996_v26 = vadd.f32 %v988_v28, %v715_v13  ;;  %v949_v48 = vpop.f32.mrb[18].mxu0  ;;  %v990_v12 = vpop.f32.mrb[18].mxu1 }
 0x170   : > { %v2083_v34 = vmul.f32 -1.442695, %v993_v36  ;;  %v950_v33 = vpop.f32.mrb[19].mxu0  ;;  %v991_v10 = vpop.f32.mrb[19].mxu1 }
 0x171   : > { %v2084_v18 = vmul.f32 -1.442695, %v994_v14  ;;  %v2085_v17 = vmul.f32 -1.442695, %v996_v26  ;;  %v3494_v33 = vmov 0  }
 0x172   : > { %2300 = vpow2.f32 %v2083_v34 }
 0x173   : > { %2302 = vpow2.f32 %v2084_v18 }
 0x174   : > { %2304 = vpow2.f32 %v2085_v17 }
 0x175   : > { %2306 = vtanh.f32 %v995_v25 }
 0x17c   : > { %v2301_v19 = vpop.eup %2300 }
 0x17d   : > { %v2303_v21 = vpop.eup %2302  ;;  %v1000_v20 = vadd.f32 1.0, %v2301_v19 }
 0x17e   : > { %v1006_v22 = vadd.f32 1.0, %v2303_v21  ;;  %v2305_v6 = vpop.eup %2304 }
 0x17f   : > { %2308 = vrcp.f32 %v1000_v20  ;;  %v2307_v23 = vpop.eup %2306  ;;  %v1013_v48 = vadd.f32 1.0, %v2305_v6 }
 0x180   : > { %2310 = vrcp.f32 %v1006_v22 }
 0x181   : > { %2312 = vrcp.f32 %v1013_v48 }
 0x189   : > { %v2309_v24 = vpop.eup %2308 }
 0x18a   : > { %v2311_v30 = vpop.eup %2310  ;;  %v1017_v12 = vmul.f32 %v2309_v24, %v2307_v23 }
 0x18b   : > { %v1016_v28 = vmul.f32 0.0, %v2311_v30  ;;  %v2313_v14 = vpop.eup %2312 }
 0x18d   : > { %v3075_v10 = vadd.f32 %v1017_v12, %v1016_v28 }
 0x18f   : > { %2314 = vtanh.f32 %v3075_v10 }
 0x199   : > { %v2315_v36 = vpop.eup %2314 }
 0x19a   : > { %v3078_v13 = vmul.f32 %v2315_v36, %v2313_v14 }
 0x19c   : > { %v1021_v25 = vpack.c.bf16 %v3078_v13, %v3078_v13 }
 0x19e   : > { %1055 = vmatmul.mubr.bf16.vlgmr.msra.gmra.mrb[20].mxu0 %v1021_v25  ;;  %1096 = vmatmul.mubr.bf16.vlgmr.msra.gmra.mrb[20].mxu1 %v1021_v25 }
 0x19f   : > { %1134 = vmatpush1.bf16.msra.mxu0 %v2825_v40  ;;  %1175 = vmatpush1.bf16.msra.mxu1 %v2828_v41 }
 0x1a0   : > { %1135 = vmatprep.subr.bf16.mxu0 %v2831_v42  ;;  %1176 = vmatprep.subr.bf16.mxu1 %v2836_v43 }
 0x1a1   : > { %1165 = vmatprep.mubr.bf16.mxu0 %v3494_v33  ;;  %1206 = vmatprep.mubr.bf16.mxu1 %v3494_v33 }
 0x1a3   : > { %1136 = vmatpush1.bf16.msra.mxu0 %v2839_v44  ;;  %1177 = vmatpush1.bf16.msra.mxu1 %v2844_v45 }
 0x1a4   : > { %1137 = vmatprep.subr.bf16.mxu0 %v2849_v46  ;;  %1178 = vmatprep.subr.bf16.mxu1 %v2852_v47 }
 0x1a7   : > { %1138 = vmatpush1.bf16.msra.mxu0 %v2857_v49  ;;  %1179 = vmatpush1.bf16.msra.mxu1 %v2862_v50 }
 0x1a8   : > { %1139 = vmatprep.subr.bf16.mxu0 %v2865_v51  ;;  %1180 = vmatprep.subr.bf16.mxu1 %v2870_v52 }
 0x1ab   : > { %1140 = vmatpush1.bf16.msra.mxu0 %v2875_v53  ;;  %1181 = vmatpush1.bf16.msra.mxu1 %v2878_v54 }
 0x1ac   : > { %1141 = vmatprep.subr.bf16.mxu0 %v2883_v55  ;;  %1182 = vmatprep.subr.bf16.mxu1 %v2886_v56 }
 0x1af   : > { %1142 = vmatpush1.bf16.msra.mxu0 %v2893_v58  ;;  %1183 = vmatpush1.bf16.msra.mxu1 %v2896_v59 }
 0x1b0   : > { %1143 = vmatprep.subr.bf16.mxu0 %v2901_v60  ;;  %1184 = vmatprep.subr.bf16.mxu1 %v2904_v61 }
 0x1b3   : > { %1144 = vmatpush1.bf16.msra.mxu0 %v2909_v62  ;;  %1185 = vmatpush1.bf16.msra.mxu1 %v2912_v63 }
 0x1b4   : > { %1145 = vmatprep.subr.bf16.mxu0 %v2917_v0  ;;  %1186 = vmatprep.subr.bf16.mxu1 %v2920_v1 }
 0x1b7   : > { %1146 = vmatpush1.bf16.msra.mxu0 %v2927_v3  ;;  %1187 = vmatpush1.bf16.msra.mxu1 %v2930_v4 }
 0x1b8   : > { %1147 = vmatprep.subr.bf16.mxu0 %v2935_v5  ;;  %1188 = vmatprep.subr.bf16.mxu1 %v2938_v7 }
 0x1bb   : > { %1148 = vmatpush1.bf16.msra.mxu0 %v2943_v8  ;;  %1189 = vmatpush1.bf16.msra.mxu1 %v2946_v9 }
 0x1bc   : > { %1244 = vmatprep.subr.bf16.mxu0 %v2819_v37  ;;  %1285 = vmatprep.subr.bf16.mxu1 %v2822_v38 }
 0x271   : > { %v1056_v16 = vpop.f32.mrb[20].mxu0  ;;  %v1097_v2 = vpop.f32.mrb[20].mxu1 }
 0x272   : > { %v1104_v11 = vadd.f32 %v1056_v16, %v3001_v27  ;;  %v1106_v15 = vadd.f32 %v1097_v2, %v3004_v29  ;;  %v1058_v26 = vpop.f32.mrb[21].mxu0  ;;  %v1099_v34 = vpop.f32.mrb[21].mxu1 }
 0x273   : > { %v1105_v18 = vadd.f32 %v1058_v26, %v3006_v31  ;;  %v1107_v17 = vadd.f32 %v1099_v34, %v3009_v32  ;;  %v1060_v19 = vpop.f32.mrb[22].mxu0  ;;  %v1101_v21 = vpop.f32.mrb[22].mxu1 }
 0x274   : > { %v2086_v20 = vmul.f32 -1.442695, %v1104_v11  ;;  %v1061_v22 = vpop.f32.mrb[23].mxu0  ;;  %v1102_v6 = vpop.f32.mrb[23].mxu1 }
 0x275   : > { %v2087_v23 = vmul.f32 -1.442695, %v1105_v18  ;;  %v2088_v24 = vmul.f32 -1.442695, %v1107_v17  ;;  %v3495_v22 = vld [vmem:[#allocation9_spill] sm:$0xff] }
 0x276   : > { %2316 = vpow2.f32 %v2086_v20 }
 0x277   : > { %2318 = vpow2.f32 %v2087_v23 }
 0x278   : > { %2320 = vpow2.f32 %v2088_v24 }
 0x279   : > { %2322 = vtanh.f32 %v1106_v15 }
 0x280   : > { %v2317_v30 = vpop.eup %2316 }
 0x281   : > { %v2319_v12 = vpop.eup %2318  ;;  %v1111_v27 = vadd.f32 1.0, %v2317_v30 }
 0x282   : > { %v1117_v29 = vadd.f32 1.0, %v2319_v12  ;;  %v2321_v31 = vpop.eup %2320 }
 0x283   : > { %2324 = vrcp.f32 %v1111_v27  ;;  %v2323_v48 = vpop.eup %2322  ;;  %v1124_v36 = vadd.f32 1.0, %v2321_v31 }
 0x284   : > { %2326 = vrcp.f32 %v1117_v29 }
 0x285   : > { %2328 = vrcp.f32 %v1124_v36 }
 0x28d   : > { %v2325_v32 = vpop.eup %2324 }
 0x28e   : > { %v2327_v28 = vpop.eup %2326  ;;  %v1128_v14 = vmul.f32 %v2325_v32, %v2323_v48 }
 0x28f   : > { %v1127_v25 = vmul.f32 %v2327_v28, %v3075_v10  ;;  %v2329_v2 = vpop.eup %2328 }
 0x291   : > { %v3121_v16 = vadd.f32 %v1128_v14, %v1127_v25 }
 0x293   : > { %2330 = vtanh.f32 %v3121_v16 }
 0x29d   : > { %v2331_v11 = vpop.eup %2330 }
 0x29e   : > { %v3124_v26 = vmul.f32 %v2331_v11, %v2329_v2 }
 0x2a0   : > { %v1132_v15 = vpack.c.bf16 %v3124_v26, %v3124_v26 }
 0x2a2   : > { %1166 = vmatmul.mubr.bf16.vlgmr.msra.gmra.mrb[24].mxu0 %v1132_v15  ;;  %1207 = vmatmul.mubr.bf16.vlgmr.msra.gmra.mrb[24].mxu1 %v1132_v15 }
 0x2a3   : > { %1245 = vmatpush1.bf16.msra.mxu0 %v2825_v40  ;;  %1286 = vmatpush1.bf16.msra.mxu1 %v2828_v41 }
 0x2a4   : > { %1246 = vmatprep.subr.bf16.mxu0 %v2831_v42  ;;  %1287 = vmatprep.subr.bf16.mxu1 %v2836_v43 }
 0x2a5   : > { %1276 = vmatprep.mubr.bf16.mxu0 %v3494_v33  ;;  %1317 = vmatprep.mubr.bf16.mxu1 %v3494_v33 }
 0x2a7   : > { %1247 = vmatpush1.bf16.msra.mxu0 %v2839_v44  ;;  %1288 = vmatpush1.bf16.msra.mxu1 %v2844_v45 }
 0x2a8   : > { %1248 = vmatprep.subr.bf16.mxu0 %v2849_v46  ;;  %1289 = vmatprep.subr.bf16.mxu1 %v2852_v47 }
 0x2ab   : > { %1249 = vmatpush1.bf16.msra.mxu0 %v2857_v49  ;;  %1290 = vmatpush1.bf16.msra.mxu1 %v2862_v50 }
 0x2ac   : > { %1250 = vmatprep.subr.bf16.mxu0 %v2865_v51  ;;  %1291 = vmatprep.subr.bf16.mxu1 %v2870_v52 }
 0x2af   : > { %1251 = vmatpush1.bf16.msra.mxu0 %v2875_v53  ;;  %1292 = vmatpush1.bf16.msra.mxu1 %v2878_v54 }
 0x2b0   : > { %1252 = vmatprep.subr.bf16.mxu0 %v2883_v55  ;;  %1293 = vmatprep.subr.bf16.mxu1 %v2886_v56 }
 0x2b3   : > { %1253 = vmatpush1.bf16.msra.mxu0 %v2893_v58  ;;  %1294 = vmatpush1.bf16.msra.mxu1 %v2896_v59 }
 0x2b4   : > { %1254 = vmatprep.subr.bf16.mxu0 %v2901_v60  ;;  %1295 = vmatprep.subr.bf16.mxu1 %v2904_v61 }
 0x2b7   : > { %1255 = vmatpush1.bf16.msra.mxu0 %v2909_v62  ;;  %1296 = vmatpush1.bf16.msra.mxu1 %v2912_v63 }
 0x2b8   : > { %1256 = vmatprep.subr.bf16.mxu0 %v2917_v0  ;;  %1297 = vmatprep.subr.bf16.mxu1 %v2920_v1 }
 0x2bb   : > { %1257 = vmatpush1.bf16.msra.mxu0 %v2927_v3  ;;  %1298 = vmatpush1.bf16.msra.mxu1 %v2930_v4 }
 0x2bc   : > { %1258 = vmatprep.subr.bf16.mxu0 %v2935_v5  ;;  %1299 = vmatprep.subr.bf16.mxu1 %v2938_v7 }
 0x2bf   : > { %1259 = vmatpush1.bf16.msra.mxu0 %v2943_v8  ;;  %1300 = vmatpush1.bf16.msra.mxu1 %v2946_v9 }
 0x2c0   : > { %1355 = vmatprep.subr.bf16.mxu0 %v2819_v37  ;;  %1396 = vmatprep.subr.bf16.mxu1 %v2822_v38 }
 0x375   : > { %v1167_v10 = vpop.f32.mrb[24].mxu0  ;;  %v1208_v34 = vpop.f32.mrb[24].mxu1 }
 0x376   : > { %v1215_v18 = vadd.f32 %v1167_v10, %v3011_v35  ;;  %v1217_v17 = vadd.f32 %v1208_v34, %v3014_v39  ;;  %v1169_v19 = vpop.f32.mrb[25].mxu0  ;;  %v1210_v21 = vpop.f32.mrb[25].mxu1 }
 0x377   : > { %v1216_v20 = vadd.f32 %v1169_v19, %v3016_v57  ;;  %v1218_v6 = vadd.f32 %v1210_v21, %v3495_v22  ;;  %v1171_v23 = vpop.f32.mrb[26].mxu0  ;;  %v1212_v24 = vpop.f32.mrb[26].mxu1  ;;  %v3496_v21 = vld [vmem:[#allocation10_spill] sm:$0xff]  ;;  %v3497_v22 = vld [vmem:[#allocation11_spill] sm:$0xff] }
 0x378   : > { %v2089_v30 = vmul.f32 -1.442695, %v1215_v18  ;;  %v1172_v12 = vpop.f32.mrb[27].mxu0  ;;  %v1213_v27 = vpop.f32.mrb[27].mxu1 }
 0x379   : > { %v2090_v29 = vmul.f32 -1.442695, %v1216_v20  ;;  %v2091_v31 = vmul.f32 -1.442695, %v1218_v6  ;;  %v3499_v27 = vld [vmem:[#allocation13_spill] sm:$0xff] }
 0x37a   : > { %2332 = vpow2.f32 %v2089_v30  ;;  %v3498_v30 = vld [vmem:[#allocation12_spill] sm:$0xff] }
 0x37b   : > { %2334 = vpow2.f32 %v2090_v29 }
 0x37c   : > { %2336 = vpow2.f32 %v2091_v31 }
 0x37d   : > { %2338 = vtanh.f32 %v1217_v17 }
 0x384   : > { %v2333_v48 = vpop.eup %2332 }
 0x385   : > { %v2335_v32 = vpop.eup %2334  ;;  %v1222_v35 = vadd.f32 1.0, %v2333_v48 }
 0x386   : > { %v1228_v39 = vadd.f32 1.0, %v2335_v32  ;;  %v2337_v57 = vpop.eup %2336 }
 0x387   : > { %2340 = vrcp.f32 %v1222_v35  ;;  %v2339_v28 = vpop.eup %2338  ;;  %v1235_v2 = vadd.f32 1.0, %v2337_v57 }
 0x388   : > { %2342 = vrcp.f32 %v1228_v39 }
 0x389   : > { %2344 = vrcp.f32 %v1235_v2 }
 0x391   : > { %v2341_v14 = vpop.eup %2340 }
 0x392   : > { %v2343_v36 = vpop.eup %2342  ;;  %v1239_v25 = vmul.f32 %v2341_v14, %v2339_v28 }
 0x393   : > { %v1238_v11 = vmul.f32 %v2343_v36, %v3121_v16  ;;  %v2345_v10 = vpop.eup %2344 }
 0x395   : > { %v3167_v15 = vadd.f32 %v1239_v25, %v1238_v11 }
 0x397   : > { %2346 = vtanh.f32 %v3167_v15 }
 0x3a1   : > { %v2347_v34 = vpop.eup %2346 }
 0x3a2   : > { %v3170_v18 = vmul.f32 %v2347_v34, %v2345_v10 }
 0x3a4   : > { %v1243_v17 = vpack.c.bf16 %v3170_v18, %v3170_v18 }
 0x3a6   : > { %1277 = vmatmul.mubr.bf16.vlgmr.msra.gmra.mrb[28].mxu0 %v1243_v17  ;;  %1318 = vmatmul.mubr.bf16.vlgmr.msra.gmra.mrb[28].mxu1 %v1243_v17 }
 0x3a7   : > { %1356 = vmatpush1.bf16.msra.mxu0 %v2825_v40  ;;  %1397 = vmatpush1.bf16.msra.mxu1 %v2828_v41 }
 0x3a8   : > { %1357 = vmatprep.subr.bf16.mxu0 %v2831_v42  ;;  %1398 = vmatprep.subr.bf16.mxu1 %v2836_v43 }
 0x3a9   : > { %1387 = vmatprep.mubr.bf16.mxu0 %v3494_v33  ;;  %1428 = vmatprep.mubr.bf16.mxu1 %v3494_v33 }
 0x3ab   : > { %1358 = vmatpush1.bf16.msra.mxu0 %v2839_v44  ;;  %1399 = vmatpush1.bf16.msra.mxu1 %v2844_v45 }
 0x3ac   : > { %1359 = vmatprep.subr.bf16.mxu0 %v2849_v46  ;;  %1400 = vmatprep.subr.bf16.mxu1 %v2852_v47 }
 0x3af   : > { %1360 = vmatpush1.bf16.msra.mxu0 %v2857_v49  ;;  %1401 = vmatpush1.bf16.msra.mxu1 %v2862_v50 }
 0x3b0   : > { %1361 = vmatprep.subr.bf16.mxu0 %v2865_v51  ;;  %1402 = vmatprep.subr.bf16.mxu1 %v2870_v52 }
 0x3b3   : > { %1362 = vmatpush1.bf16.msra.mxu0 %v2875_v53  ;;  %1403 = vmatpush1.bf16.msra.mxu1 %v2878_v54 }
 0x3b4   : > { %1363 = vmatprep.subr.bf16.mxu0 %v2883_v55  ;;  %1404 = vmatprep.subr.bf16.mxu1 %v2886_v56 }
 0x3b7   : > { %1364 = vmatpush1.bf16.msra.mxu0 %v2893_v58  ;;  %1405 = vmatpush1.bf16.msra.mxu1 %v2896_v59 }
 0x3b8   : > { %1365 = vmatprep.subr.bf16.mxu0 %v2901_v60  ;;  %1406 = vmatprep.subr.bf16.mxu1 %v2904_v61 }
 0x3bb   : > { %1366 = vmatpush1.bf16.msra.mxu0 %v2909_v62  ;;  %1407 = vmatpush1.bf16.msra.mxu1 %v2912_v63 }
 0x3bc   : > { %1367 = vmatprep.subr.bf16.mxu0 %v2917_v0  ;;  %1408 = vmatprep.subr.bf16.mxu1 %v2920_v1 }
 0x3bf   : > { %1368 = vmatpush1.bf16.msra.mxu0 %v2927_v3  ;;  %1409 = vmatpush1.bf16.msra.mxu1 %v2930_v4 }
 0x3c0   : > { %1369 = vmatprep.subr.bf16.mxu0 %v2935_v5  ;;  %1410 = vmatprep.subr.bf16.mxu1 %v2938_v7 }
 0x3c3   : > { %1370 = vmatpush1.bf16.msra.mxu0 %v2943_v8  ;;  %1411 = vmatpush1.bf16.msra.mxu1 %v2946_v9 }
 0x3c4   : > { %1466 = vmatprep.subr.bf16.mxu0 %v2819_v37  ;;  %1507 = vmatprep.subr.bf16.mxu1 %v2822_v38 }
 0x479   : > { %v1278_v16 = vpop.f32.mrb[28].mxu0  ;;  %v1319_v19 = vpop.f32.mrb[28].mxu1 }
 0x47a   : > { %v1326_v20 = vadd.f32 %v1278_v16, %v3496_v21  ;;  %v1328_v6 = vadd.f32 %v1319_v19, %v3497_v22  ;;  %v1280_v23 = vpop.f32.mrb[29].mxu0  ;;  %v1321_v24 = vpop.f32.mrb[29].mxu1 }
 0x47b   : > { %v1327_v12 = vadd.f32 %v1280_v23, %v3498_v30  ;;  %v1329_v29 = vadd.f32 %v1321_v24, %v3499_v27  ;;  %v1282_v31 = vpop.f32.mrb[30].mxu0  ;;  %v1323_v48 = vpop.f32.mrb[30].mxu1 }
 0x47c   : > { %v2092_v32 = vmul.f32 -1.442695, %v1326_v20  ;;  %v1283_v35 = vpop.f32.mrb[31].mxu0  ;;  %v1324_v39 = vpop.f32.mrb[31].mxu1 }
 0x47d   : > { %v2093_v37 = vmul.f32 -1.442695, %v1327_v12  ;;  %v2094_v38 = vmul.f32 -1.442695, %v1329_v29 }
 0x47e   : > { %2348 = vpow2.f32 %v2092_v32 }
 0x47f   : > { %2350 = vpow2.f32 %v2093_v37 }
 0x480   : > { %2352 = vpow2.f32 %v2094_v38 }
 0x481   : > { %2354 = vtanh.f32 %v1328_v6 }
 0x488   : > { %v2349_v57 = vpop.eup %2348 }
 0x489   : > { %v2351_v28 = vpop.eup %2350  ;;  %v1333_v14 = vadd.f32 1.0, %v2349_v57 }
 0x48a   : > { %v1339_v36 = vadd.f32 1.0, %v2351_v28  ;;  %v2353_v25 = vpop.eup %2352 }
 0x48b   : > { %2356 = vrcp.f32 %v1333_v14  ;;  %v2355_v2 = vpop.eup %2354  ;;  %v1346_v17 = vadd.f32 1.0, %v2353_v25 }
 0x48c   : > { %2358 = vrcp.f32 %v1339_v36 }
 0x48d   : > { %2360 = vrcp.f32 %v1346_v17  ;;  %v3281_v17 = vld [vmem:[%s2758_s15 + $0x24] ss:$16 sps:$4 sm:$0xff]  }
 0x495   : > { %v2357_v11 = vpop.eup %2356 }
 0x496   : > { %v2359_v10 = vpop.eup %2358  ;;  %v1350_v34 = vmul.f32 %v2357_v11, %v2355_v2 }
 0x497   : > { %v1349_v16 = vmul.f32 %v2359_v10, %v3167_v15  ;;  %v2361_v21 = vpop.eup %2360  ;;  %v3273_v10 = vld [vmem:[%s2758_s15] ss:$16 sps:$4 sm:$0xff]  }
 0x499   : > { %v3213_v19 = vadd.f32 %v1350_v34, %v1349_v16  ;;  %v3277_v34 = vld [vmem:[%s2758_s15 + $0x8] ss:$16 sps:$4 sm:$0xff]   ;;  %v3285_v16 = vld [vmem:[%s2758_s15 + $0x2c] ss:$16 sps:$4 sm:$0xff]  }
 0x49b   : > { %2362 = vtanh.f32 %v3213_v19 }
 0x4a5   : > { %v2363_v20 = vpop.eup %2362 }
 0x4a6   : > { %v3216_v22 = vmul.f32 %v2363_v20, %v2361_v21  ;;  %v3295_v21 = vld [vmem:[%s2758_s15 + $0x28] ss:$16 sps:$4 sm:$0xff]   ;;  %v3299_v20 = vld [vmem:[%s2758_s15 + $0x44] ss:$16 sps:$4 sm:$0xff]  }
 0x4a8   : > { %v1354_v6 = vpack.c.bf16 %v3216_v22, %v3216_v22 }
 0x4aa   : > { %1388 = vmatmul.mubr.bf16.vlgmr.msra.gmra.mrb[32].mxu0 %v1354_v6  ;;  %1429 = vmatmul.mubr.bf16.vlgmr.msra.gmra.mrb[32].mxu1 %v1354_v6  ;;  %v3303_v6 = vld [vmem:[%s2758_s15 + $0x4c] ss:$16 sps:$4 sm:$0xff]  }
 0x4ab   : > { %1467 = vmatpush1.bf16.msra.mxu0 %v2825_v40  ;;  %1508 = vmatpush1.bf16.msra.mxu1 %v2828_v41  ;;  %v3253_v40 = vld [vmem:[%s2758_s15 + $0x4] ss:$16 sps:$4 sm:$0xff]   ;;  %v3257_v41 = vld [vmem:[%s2758_s15 + $0xc] ss:$16 sps:$4 sm:$0xff]  }
 0x4ac   : > { %1468 = vmatprep.subr.bf16.mxu0 %v2831_v42  ;;  %1509 = vmatprep.subr.bf16.mxu1 %v2836_v43 }
 0x4ad   : > { %1498 = vmatprep.mubr.bf16.mxu0 %v3494_v33  ;;  %1539 = vmatprep.mubr.bf16.mxu1 %v3494_v33 }
 0x4af   : > { %1469 = vmatpush1.bf16.msra.mxu0 %v2839_v44  ;;  %1510 = vmatpush1.bf16.msra.mxu1 %v2844_v45  ;;  %v3500_v44 = vld [vmem:[#allocation14_spill] sm:$0xff] }
 0x4b0   : > { %1470 = vmatprep.subr.bf16.mxu0 %v2849_v46  ;;  %1511 = vmatprep.subr.bf16.mxu1 %v2852_v47  ;;  %v3501_v46 = vld [vmem:[#allocation15_spill] sm:$0xff] }
 0x4b3   : > { %1471 = vmatpush1.bf16.msra.mxu0 %v2857_v49  ;;  %1512 = vmatpush1.bf16.msra.mxu1 %v2862_v50 }
 0x4b4   : > { %1472 = vmatprep.subr.bf16.mxu0 %v2865_v51  ;;  %1513 = vmatprep.subr.bf16.mxu1 %v2870_v52  ;;  %v3502_v51 = vld [vmem:[#allocation16_spill] sm:$0xff] }
 0x4b7   : > { %1473 = vmatpush1.bf16.msra.mxu0 %v2875_v53  ;;  %1514 = vmatpush1.bf16.msra.mxu1 %v2878_v54  ;;  %v3503_v53 = vld [vmem:[#allocation17_spill] sm:$0xff] }
 0x4b8   : > { %1474 = vmatprep.subr.bf16.mxu0 %v2883_v55  ;;  %1515 = vmatprep.subr.bf16.mxu1 %v2886_v56 }
 0x4bb   : > { %1475 = vmatpush1.bf16.msra.mxu0 %v2893_v58  ;;  %1516 = vmatpush1.bf16.msra.mxu1 %v2896_v59 }
 0x4bc   : > { %1476 = vmatprep.subr.bf16.mxu0 %v2901_v60  ;;  %1517 = vmatprep.subr.bf16.mxu1 %v2904_v61 }
 0x4bf   : > { %1477 = vmatpush1.bf16.msra.mxu0 %v2909_v62  ;;  %1518 = vmatpush1.bf16.msra.mxu1 %v2912_v63 }
 0x4c0   : > { %1478 = vmatprep.subr.bf16.mxu0 %v2917_v0  ;;  %1519 = vmatprep.subr.bf16.mxu1 %v2920_v1 }
 0x4c3   : > { %1479 = vmatpush1.bf16.msra.mxu0 %v2927_v3  ;;  %1520 = vmatpush1.bf16.msra.mxu1 %v2930_v4 }
 0x4c4   : > { %1480 = vmatprep.subr.bf16.mxu0 %v2935_v5  ;;  %1521 = vmatprep.subr.bf16.mxu1 %v2938_v7 }
 0x4c7   : > { %1481 = vmatpush1.bf16.msra.mxu0 %v2943_v8  ;;  %1522 = vmatpush1.bf16.msra.mxu1 %v2946_v9 }
 0x4c8   : > { %1577 = vmatprep.subr.bf16.mxu0 %v3253_v40  ;;  %1618 = vmatprep.subr.bf16.mxu1 %v3257_v41 }
 0x57d   : > { %v1389_v42 = vpop.f32.mrb[32].mxu0  ;;  %v1430_v43 = vpop.f32.mrb[32].mxu1 }
 0x57e   : > { %v1437_v45 = vadd.f32 %v1389_v42, %v3500_v44  ;;  %v1439_v47 = vadd.f32 %v1430_v43, %v3501_v46  ;;  %v1391_v49 = vpop.f32.mrb[33].mxu0  ;;  %v1432_v50 = vpop.f32.mrb[33].mxu1  ;;  %v3307_v42 = vld [vmem:[%s2758_s15 + $0x40] ss:$16 sps:$4 sm:$0xff]   ;;  %v3311_v43 = vld [vmem:[%s2758_s15 + $0x48] ss:$16 sps:$4 sm:$0xff]  }
 0x57f   : > { %v1438_v52 = vadd.f32 %v1391_v49, %v3502_v51  ;;  %v1440_v54 = vadd.f32 %v1432_v50, %v3503_v53  ;;  %v1393_v55 = vpop.f32.mrb[34].mxu0  ;;  %v1434_v56 = vpop.f32.mrb[34].mxu1  ;;  %v3315_v44 = vld [vmem:[%s2758_s15 + $0x64] ss:$16 sps:$4 sm:$0xff]   ;;  %v3323_v46 = vld [vmem:[%s2758_s15 + $0x60] ss:$16 sps:$4 sm:$0xff]  }
 0x580   : > { %v2095_v15 = vmul.f32 -1.442695, %v1437_v45  ;;  %v1394_v23 = vpop.f32.mrb[35].mxu0  ;;  %v1435_v24 = vpop.f32.mrb[35].mxu1  ;;  %v3319_v45 = vld [vmem:[%s2758_s15 + $0x6c] ss:$16 sps:$4 sm:$0xff]  }
 0x581   : > { %v2096_v30 = vmul.f32 -1.442695, %v1438_v52  ;;  %v2097_v12 = vmul.f32 -1.442695, %v1440_v54  ;;  %v3331_v49 = vld [vmem:[%s2758_s15 + $0x84] ss:$16 sps:$4 sm:$0xff]  }
 0x582   : > { %2364 = vpow2.f32 %v2095_v15  ;;  %v3335_v50 = vld [vmem:[%s2758_s15 + $0x8c] ss:$16 sps:$4 sm:$0xff]  }
 0x583   : > { %2366 = vpow2.f32 %v2096_v30 }
 0x584   : > { %2368 = vpow2.f32 %v2097_v12 }
 0x585   : > { %2370 = vtanh.f32 %v1439_v47  ;;  %v3327_v47 = vld [vmem:[%s2758_s15 + $0x68] ss:$16 sps:$4 sm:$0xff]  }
 0x58c   : > { %v2365_v27 = vpop.eup %2364 }
 0x58d   : > { %v2367_v29 = vpop.eup %2366  ;;  %v1444_v31 = vadd.f32 1.0, %v2365_v27 }
 0x58e   : > { %v1450_v48 = vadd.f32 1.0, %v2367_v29  ;;  %v2369_v32 = vpop.eup %2368 }
 0x58f   : > { %2372 = vrcp.f32 %v1444_v31  ;;  %v2371_v35 = vpop.eup %2370  ;;  %v1457_v57 = vadd.f32 1.0, %v2369_v32 }
 0x590   : > { %2374 = vrcp.f32 %v1450_v48 }
 0x591   : > { %2376 = vrcp.f32 %v1457_v57  ;;  %v2448_v57 = vld [vmem:[%s2758_s15 + $0xa4] ss:$16 sps:$4 sm:$0xff]  }
 0x599   : > { %v2373_v39 = vpop.eup %2372 }
 0x59a   : > { %v2375_v37 = vpop.eup %2374  ;;  %v1461_v38 = vmul.f32 %v2373_v39, %v2371_v35 }
 0x59b   : > { %v1460_v28 = vmul.f32 %v2375_v37, %v3213_v19  ;;  %v2377_v36 = vpop.eup %2376  ;;  %v3291_v19 = vld [vmem:[%s2758_s15 + $0x20] ss:$16 sps:$4 sm:$0xff]  }
 0x59d   : > { %v3265_v14 = vadd.f32 %v1461_v38, %v1460_v28  ;;  %v2447_v38 = vld [vmem:[%s2758_s15 + $0x88] ss:$16 sps:$4 sm:$0xff]   ;;  %v2449_v28 = vld [vmem:[%s2758_s15 + $0xac] ss:$16 sps:$4 sm:$0xff]  }
 0x59f   : > { %2378 = vtanh.f32 %v3265_v14 }
 0x5a9   : > { %v2379_v25 = vpop.eup %2378 }
 0x5aa   : > { %v3268_v2 = vmul.f32 %v2379_v25, %v2377_v36  ;;  %v2451_v36 = vld [vmem:[%s2758_s15 + $0xa8] ss:$16 sps:$4 sm:$0xff]   ;;  %v2452_v25 = vld [vmem:[%s2758_s15 + $0xc4] ss:$16 sps:$4 sm:$0xff]  }
 0x5ac   : > { %v1465_v11 = vpack.c.bf16 %v3268_v2, %v3268_v2 }
 0x5ae   : > { %1499 = vmatmul.mubr.bf16.vlgmr.msra.gmra.mrb[36].mxu0 %v1465_v11  ;;  %1540 = vmatmul.mubr.bf16.vlgmr.msra.gmra.mrb[36].mxu1 %v1465_v11  ;;  %v2453_v11 = vld [vmem:[%s2758_s15 + $0xcc] ss:$16 sps:$4 sm:$0xff]  }
 0x5af   : > { %1578 = vmatpush1.bf16.msra.mxu0 %v3273_v10  ;;  %1619 = vmatpush1.bf16.msra.mxu1 %v3277_v34 }
 0x5b0   : > { %1579 = vmatprep.subr.bf16.mxu0 %v3281_v17  ;;  %1620 = vmatprep.subr.bf16.mxu1 %v3285_v16 }
 0x5b1   : > { %1609 = vmatprep.mubr.bf16.mxu0 %v3494_v33  ;;  %1650 = vmatprep.mubr.bf16.mxu1 %v3494_v33 }
 0x5b3   : > { %1580 = vmatpush1.bf16.msra.mxu0 %v3291_v19  ;;  %1621 = vmatpush1.bf16.msra.mxu1 %v3295_v21 }
 0x5b4   : > { %1581 = vmatprep.subr.bf16.mxu0 %v3299_v20  ;;  %1622 = vmatprep.subr.bf16.mxu1 %v3303_v6 }
 0x5b7   : > { %1582 = vmatpush1.bf16.msra.mxu0 %v3307_v42  ;;  %1623 = vmatpush1.bf16.msra.mxu1 %v3311_v43 }
 0x5b8   : > { %1583 = vmatprep.subr.bf16.mxu0 %v3315_v44  ;;  %1624 = vmatprep.subr.bf16.mxu1 %v3319_v45 }
 0x5bb   : > { %1584 = vmatpush1.bf16.msra.mxu0 %v3323_v46  ;;  %1625 = vmatpush1.bf16.msra.mxu1 %v3327_v47 }
 0x5bc   : > { %1585 = vmatprep.subr.bf16.mxu0 %v3331_v49  ;;  %1626 = vmatprep.subr.bf16.mxu1 %v3335_v50 }
 0x5bf   : > { %1586 = vmatpush1.bf16.msra.mxu0 %v2893_v58  ;;  %1627 = vmatpush1.bf16.msra.mxu1 %v2896_v59 }
 0x5c0   : > { %1587 = vmatprep.subr.bf16.mxu0 %v2901_v60  ;;  %1628 = vmatprep.subr.bf16.mxu1 %v2904_v61  ;;  %v3504_v60 = vld [vmem:[#allocation18_spill] sm:$0xff] }
 0x5c3   : > { %1588 = vmatpush1.bf16.msra.mxu0 %v2909_v62  ;;  %1629 = vmatpush1.bf16.msra.mxu1 %v2912_v63  ;;  %v3505_v62 = vld [vmem:[#allocation19_spill] sm:$0xff] }
 0x5c4   : > { %1589 = vmatprep.subr.bf16.mxu0 %v2917_v0  ;;  %1630 = vmatprep.subr.bf16.mxu1 %v2920_v1 }
 0x5c7   : > { %1590 = vmatpush1.bf16.msra.mxu0 %v2927_v3  ;;  %1631 = vmatpush1.bf16.msra.mxu1 %v2930_v4  ;;  %v3506_v3 = vld [vmem:[#allocation20_spill] sm:$0xff] }
 0x5c8   : > { %1591 = vmatprep.subr.bf16.mxu0 %v2935_v5  ;;  %1632 = vmatprep.subr.bf16.mxu1 %v2938_v7  ;;  %v3507_v5 = vld [vmem:[#allocation21_spill] sm:$0xff] }
 0x5cb   : > { %1592 = vmatpush1.bf16.msra.mxu0 %v2943_v8  ;;  %1633 = vmatpush1.bf16.msra.mxu1 %v2946_v9 }
 0x5cc   : > { %1688 = vmatprep.subr.bf16.mxu0 %v3253_v40  ;;  %1729 = vmatprep.subr.bf16.mxu1 %v3257_v41 }
 0x681   : > { %v1500_v58 = vpop.f32.mrb[36].mxu0  ;;  %v1541_v59 = vpop.f32.mrb[36].mxu1 }
 0x682   : > { %v1548_v61 = vadd.f32 %v1500_v58, %v3504_v60  ;;  %v1550_v63 = vadd.f32 %v1541_v59, %v3505_v62  ;;  %v1502_v0 = vpop.f32.mrb[37].mxu0  ;;  %v1543_v1 = vpop.f32.mrb[37].mxu1  ;;  %v3511_v58 = vld [vmem:[#allocation25_spill] sm:$0xff] }
 0x683   : > { %v1549_v4 = vadd.f32 %v1502_v0, %v3506_v3  ;;  %v1551_v7 = vadd.f32 %v1543_v1, %v3507_v5  ;;  %v1504_v51 = vpop.f32.mrb[38].mxu0  ;;  %v1545_v8 = vpop.f32.mrb[38].mxu1 }
 0x684   : > { %v2098_v52 = vmul.f32 -1.442695, %v1548_v61  ;;  %v1505_v9 = vpop.f32.mrb[39].mxu0  ;;  %v1546_v53 = vpop.f32.mrb[39].mxu1 }
 0x685   : > { %v2099_v40 = vmul.f32 -1.442695, %v1549_v4  ;;  %v2100_v41 = vmul.f32 -1.442695, %v1551_v7 }
 0x686   : > { %2380 = vpow2.f32 %v2098_v52 }
 0x687   : > { %2382 = vpow2.f32 %v2099_v40 }
 0x688   : > { %2384 = vpow2.f32 %v2100_v41 }
 0x689   : > { %2386 = vtanh.f32 %v1550_v63 }
 0x690   : > { %v2381_v54 = vpop.eup %2380 }
 0x691   : > { %v2383_v55 = vpop.eup %2382  ;;  %v1555_v56 = vadd.f32 1.0, %v2381_v54 }
 0x692   : > { %v1561_v15 = vadd.f32 1.0, %v2383_v55  ;;  %v2385_v23 = vpop.eup %2384 }
 0x693   : > { %2388 = vrcp.f32 %v1555_v56  ;;  %v2387_v24 = vpop.eup %2386  ;;  %v1568_v29 = vadd.f32 1.0, %v2385_v23 }
 0x694   : > { %2390 = vrcp.f32 %v1561_v15 }
 0x695   : > { %2392 = vrcp.f32 %v1568_v29 }
 0x69d   : > { %v2389_v30 = vpop.eup %2388 }
 0x69e   : > { %v2391_v12 = vpop.eup %2390  ;;  %v1572_v27 = vmul.f32 %v2389_v30, %v2387_v24 }
 0x69f   : > { %v1571_v31 = vmul.f32 %v2391_v12, %v3265_v14  ;;  %v2393_v32 = vpop.eup %2392  ;;  %v2450_v14 = vld [vmem:[%s2758_s15 + $0xa0] ss:$16 sps:$4 sm:$0xff]  }
 0x6a1   : > { %v3359_v48 = vadd.f32 %v1572_v27, %v1571_v31  ;;  %v3512_v27 = vld [vmem:[#allocation26_spill] sm:$0xff]  ;;  %v3513_v31 = vld [vmem:[#allocation27_spill] sm:$0xff] }
 0x6a3   : > { %2394 = vtanh.f32 %v3359_v48 }
 0x6ad   : > { %v2395_v35 = vpop.eup %2394 }
 0x6ae   : > { %v3362_v39 = vmul.f32 %v2395_v35, %v2393_v32 }
 0x6b0   : > { %v1576_v37 = vpack.c.bf16 %v3362_v39, %v3362_v39 }
 0x6b2   : > { %1610 = vmatmul.mubr.bf16.vlgmr.msra.gmra.mrb[40].mxu0 %v1576_v37  ;;  %1651 = vmatmul.mubr.bf16.vlgmr.msra.gmra.mrb[40].mxu1 %v1576_v37 }
 0x6b3   : > { %1689 = vmatpush1.bf16.msra.mxu0 %v3273_v10  ;;  %1730 = vmatpush1.bf16.msra.mxu1 %v3277_v34  ;;  %v2454_v10 = vld [vmem:[%s2758_s15 + $0xc0] ss:$16 sps:$4 sm:$0xff]   ;;  %v2455_v34 = vld [vmem:[%s2758_s15 + $0xc8] ss:$16 sps:$4 sm:$0xff]  }
 0x6b4   : > { %1690 = vmatprep.subr.bf16.mxu0 %v3281_v17  ;;  %1731 = vmatprep.subr.bf16.mxu1 %v3285_v16  ;;  %v2456_v17 = vld [vmem:[%s2758_s15 + $0xe4] ss:$16 sps:$4 sm:$0xff]   ;;  %v2457_v16 = vld [vmem:[%s2758_s15 + $0xec] ss:$16 sps:$4 sm:$0xff]  }
 0x6b5   : > { %1720 = vmatprep.mubr.bf16.mxu0 %v3494_v33  ;;  %1761 = vmatprep.mubr.bf16.mxu1 %v3494_v33  ;;  %v2446_v33 = vld [vmem:[%s2758_s15 + $0x80] ss:$16 sps:$4 sm:$0xff]  }
 0x6b7   : > { %1691 = vmatpush1.bf16.msra.mxu0 %v3291_v19  ;;  %1732 = vmatpush1.bf16.msra.mxu1 %v3295_v21  ;;  %v2458_v19 = vld [vmem:[%s2758_s15 + $0xe0] ss:$16 sps:$4 sm:$0xff]   ;;  %v2459_v21 = vld [vmem:[%s2758_s15 + $0xe8] ss:$16 sps:$4 sm:$0xff]  }
 0x6b8   : > { %1692 = vmatprep.subr.bf16.mxu0 %v3299_v20  ;;  %1733 = vmatprep.subr.bf16.mxu1 %v3303_v6 }
 0x6bb   : > { %1693 = vmatpush1.bf16.msra.mxu0 %v3307_v42  ;;  %1734 = vmatpush1.bf16.msra.mxu1 %v3311_v43  ;;  %v3508_v42 = vld [vmem:[#allocation22_spill] sm:$0xff] }
 0x6bc   : > { %1694 = vmatprep.subr.bf16.mxu0 %v3315_v44  ;;  %1735 = vmatprep.subr.bf16.mxu1 %v3319_v45  ;;  %v3509_v44 = vld [vmem:[#allocation23_spill] sm:$0xff] }
 0x6bf   : > { %1695 = vmatpush1.bf16.msra.mxu0 %v3323_v46  ;;  %1736 = vmatpush1.bf16.msra.mxu1 %v3327_v47 }
 0x6c0   : > { %1696 = vmatprep.subr.bf16.mxu0 %v3331_v49  ;;  %1737 = vmatprep.subr.bf16.mxu1 %v3335_v50  ;;  %v3510_v49 = vld [vmem:[#allocation24_spill] sm:$0xff] }
 0x6c3   : > { %1697 = vmatpush1.bf16.msra.mxu0 %v2446_v33  ;;  %1738 = vmatpush1.bf16.msra.mxu1 %v2447_v38  ;;  %v3514_v33 = vld [vmem:[#allocation28_spill] sm:$0xff] }
 0x6c4   : > { %1698 = vmatprep.subr.bf16.mxu0 %v2448_v57  ;;  %1739 = vmatprep.subr.bf16.mxu1 %v2449_v28 }
 0x6c7   : > { %1699 = vmatpush1.bf16.msra.mxu0 %v2450_v14  ;;  %1740 = vmatpush1.bf16.msra.mxu1 %v2451_v36 }
 0x6c8   : > { %1700 = vmatprep.subr.bf16.mxu0 %v2452_v25  ;;  %1741 = vmatprep.subr.bf16.mxu1 %v2453_v11 }
 0x6cb   : > { %1701 = vmatpush1.bf16.msra.mxu0 %v2454_v10  ;;  %1742 = vmatpush1.bf16.msra.mxu1 %v2455_v34 }
 0x6cc   : > { %1702 = vmatprep.subr.bf16.mxu0 %v2456_v17  ;;  %1743 = vmatprep.subr.bf16.mxu1 %v2457_v16 }
 0x6cf   : > { %1703 = vmatpush1.bf16.msra.mxu0 %v2458_v19  ;;  %1744 = vmatpush1.bf16.msra.mxu1 %v2459_v21 }
 0x785   : > { %v1611_v20 = vpop.f32.mrb[40].mxu0  ;;  %v1652_v6 = vpop.f32.mrb[40].mxu1 }
 0x786   : > { %v1659_v43 = vadd.f32 %v1611_v20, %v3508_v42  ;;  %v1661_v45 = vadd.f32 %v1652_v6, %v3509_v44  ;;  %v1613_v46 = vpop.f32.mrb[41].mxu0  ;;  %v1654_v47 = vpop.f32.mrb[41].mxu1 }
 0x787   : > { %v1660_v50 = vadd.f32 %v1613_v46, %v3510_v49  ;;  %v1662_v59 = vadd.f32 %v1654_v47, %v3511_v58  ;;  %v1615_v60 = vpop.f32.mrb[42].mxu0  ;;  %v1656_v61 = vpop.f32.mrb[42].mxu1 }
 0x788   : > { %v2101_v62 = vmul.f32 -1.442695, %v1659_v43  ;;  %v1616_v63 = vpop.f32.mrb[43].mxu0  ;;  %v1657_v0 = vpop.f32.mrb[43].mxu1  ;;  %v1803_v60 = vpack.c.bf16 (!%p2107_p3), %v3216_v22, %v3170_v18  ;;  %v1804_v61 = vpack.c.bf16 (!%p2107_p3), %v3362_v39, %v3268_v2 }
 0x789   : > { %v2102_v1 = vmul.f32 -1.442695, %v1660_v50  ;;  %v2103_v3 = vmul.f32 -1.442695, %v1662_v59  ;;  %v1802_v59 = vpack.c.bf16 (!%p2107_p3), %v3124_v26, %v3078_v13 }
 0x78a   : > { %2396 = vpow2.f32 %v2101_v62  ;;  %1807 = vst [vmem:[#allocation2 + $0x8] sm:$0xff] (!%p2107_p3), %v1803_v60  ;;  %1808 = vst [vmem:[#allocation2 + $0x10] sm:$0xff] (!%p2107_p3), %v1804_v61 }
 0x78b   : > { %2398 = vpow2.f32 %v2102_v1  ;;  %1806 = vst [vmem:[#allocation2] sm:$0xff] (!%p2107_p3), %v1802_v59 }
 0x78c   : > { %2400 = vpow2.f32 %v2103_v3 }
 0x78d   : > { %2402 = vtanh.f32 %v1661_v45 }
 0x794   : > { %v2397_v4 = vpop.eup %2396 }
 0x795   : > { %v2399_v5 = vpop.eup %2398  ;;  %v1666_v7 = vadd.f32 1.0, %v2397_v4 }
 0x796   : > { %v1672_v51 = vadd.f32 1.0, %v2399_v5  ;;  %v2401_v8 = vpop.eup %2400 }
 0x797   : > { %2404 = vrcp.f32 %v1666_v7  ;;  %v2403_v52 = vpop.eup %2402  ;;  %v1679_v41 = vadd.f32 1.0, %v2401_v8 }
 0x798   : > { %2406 = vrcp.f32 %v1672_v51 }
 0x799   : > { %2408 = vrcp.f32 %v1679_v41 }
 0x7a1   : > { %v2405_v9 = vpop.eup %2404 }
 0x7a2   : > { %v2407_v53 = vpop.eup %2406  ;;  %v1683_v40 = vmul.f32 %v2405_v9, %v2403_v52 }
 0x7a3   : > { %v1682_v54 = vmul.f32 %v2407_v53, %v3359_v48  ;;  %v2409_v56 = vpop.eup %2408  ;;  %v3515_v48 = vld [vmem:[#allocation29_spill] sm:$0xff] }
 0x7a5   : > { %v1684_v55 = vadd.f32 %v1683_v40, %v1682_v54 }
 0x7a7   : > { %2410 = vtanh.f32 %v1684_v55 }
 0x7b1   : > { %v2411_v15 = vpop.eup %2410 }
 0x7b2   : > { %v1686_v23 = vmul.f32 %v2411_v15, %v2409_v56 }
 0x7b4   : > { %v1687_v24 = vpack.c.bf16 %v1686_v23, %v1686_v23 }
 0x7b6   : > { %1721 = vmatmul.mubr.bf16.vlgmr.msra.gmra.mrb[44].mxu0 %v1687_v24  ;;  %1762 = vmatmul.mubr.bf16.vlgmr.msra.gmra.mrb[44].mxu1 %v1687_v24 }
 0x889   : > { %v1722_v30 = vpop.f32.mrb[44].mxu0  ;;  %v1763_v12 = vpop.f32.mrb[44].mxu1 }
 0x88a   : > { %v1770_v29 = vadd.f32 %v1722_v30, %v3512_v27  ;;  %v1772_v32 = vadd.f32 %v1763_v12, %v3513_v31  ;;  %v1724_v35 = vpop.f32.mrb[45].mxu0  ;;  %v1765_v37 = vpop.f32.mrb[45].mxu1 }
 0x88b   : > { %v1771_v38 = vadd.f32 %v1724_v35, %v3514_v33  ;;  %v1773_v57 = vadd.f32 %v1765_v37, %v3515_v48  ;;  %v1726_v28 = vpop.f32.mrb[46].mxu0  ;;  %v1767_v14 = vpop.f32.mrb[46].mxu1 }
 0x88c   : > { %v2104_v36 = vmul.f32 -1.442695, %v1770_v29  ;;  %v1727_v25 = vpop.f32.mrb[47].mxu0  ;;  %v1768_v11 = vpop.f32.mrb[47].mxu1 }
 0x88d   : > { %v2105_v10 = vmul.f32 -1.442695, %v1771_v38  ;;  %v2106_v34 = vmul.f32 -1.442695, %v1773_v57 }
 0x88e   : > { %2412 = vpow2.f32 %v2104_v36 }
 0x88f   : > { %2414 = vpow2.f32 %v2105_v10 }
 0x890   : > { %2416 = vpow2.f32 %v2106_v34 }
 0x891   : > { %2418 = vtanh.f32 %v1772_v32 }
 0x898   : > { %v2413_v17 = vpop.eup %2412 }
 0x899   : > { %v2415_v16 = vpop.eup %2414  ;;  %v1777_v19 = vadd.f32 1.0, %v2413_v17 }
 0x89a   : > { %v1783_v21 = vadd.f32 1.0, %v2415_v16  ;;  %v2417_v20 = vpop.eup %2416 }
 0x89b   : > { %2420 = vrcp.f32 %v1777_v19  ;;  %v2419_v6 = vpop.eup %2418  ;;  %v1790_v45 = vadd.f32 1.0, %v2417_v20 }
 0x89c   : > { %2422 = vrcp.f32 %v1783_v21 }
 0x89d   : > { %2424 = vrcp.f32 %v1790_v45 }
 0x8a5   : > { %v2421_v42 = vpop.eup %2420 }
 0x8a6   : > { %v2423_v43 = vpop.eup %2422  ;;  %v1794_v44 = vmul.f32 %v2421_v42, %v2419_v6 }
 0x8a7   : > { %v1793_v46 = vmul.f32 %v2423_v43, %v1684_v55  ;;  %v2425_v49 = vpop.eup %2424 }
 0x8a9   : > { %v1795_v47 = vadd.f32 %v1794_v44, %v1793_v46 }
 0x8ab   : > { %2426 = vtanh.f32 %v1795_v47 }
 0x8b0   : > { %1801 = sbr.rel (%p2107_p3) target bundleno = 2235 (0x8bb), region = 60 }
 0x8b5   : > { %v2427_v50 = vpop.eup %2426 }
 0x8b6   : > { %v1797_v58 = vmul.f32 %v2427_v50, %v2425_v49 }
 0x8b8   : > { %v1805_v62 = vpack.c.bf16 %v1797_v58, %v1686_v23 }
 0x8ba   : > { %1809 = vst [vmem:[#allocation2 + $0x18] sm:$0xff] %v1805_v62 }
 0x8bb PF: > { %p2108_p6 = scmp.ne.s32.totalorder %s2629_s25, 1 }
 0x8bc   : > { %v2460_v63 = vld [vmem:[%s3462_s4] sm:$0xff] (!%p2108_p6)   ;;  %v2573_v13 = vmov (!%p2108_p6), 0.0   ;;  %v2461_v26 = vld [vmem:[%s3462_s4 + $0x8] sm:$0xff] (!%p2108_p6)   ;;  %vm2574_vm0 = vmmov (!%p2108_p6), 0   ;;  %v2462_v18 = vld [vmem:[%s3462_s4 + $0x10] sm:$0xff] (!%p2108_p6)   ;;  %v1814_v3 = vpack.c.bf16 (!%p2108_p6), %v1797_v58, %v1797_v58 }
 0x8bd   : > { %1813 = sbr.rel (%p2108_p6) target bundleno = 2484 (0x9b4), region = 64  ;;  %2131 = vmatprep.subr.bf16.mxu0 (!%p2108_p6), %v2573_v13  ;;  %2147 = vmatprep.mubr.msk.bf16.mxu0 (!%p2108_p6), %vm2574_vm0, %v2573_v13  ;;  %v2463_v22 = vld [vmem:[%s3462_s4 + $0x18] sm:$0xff] (!%p2108_p6)   ;;  %v2464_v2 = vld [vmem:[%s3462_s4 + $0x20] sm:$0xff] (!%p2108_p6)   ;;  %v2465_v39 = vld [vmem:[%s3462_s4 + $0x28] sm:$0xff] (!%p2108_p6)  }
 0x8be   : > { %2132 = vmatpush3.bf16.msra.mxu0 (!%p2108_p6), %v2460_v63  ;;  %v2466_v0 = vld [vmem:[%s3462_s4 + $0x30] sm:$0xff] (!%p2108_p6)   ;;  %v2467_v1 = vld [vmem:[%s3462_s4 + $0x38] sm:$0xff] (!%p2108_p6)   ;;  %v2109_v4 = vld [vmem:[%s3463_s5] ss:$0 sm:$0xff] (!%p2108_p6) }
 0x8bf   : > { %2133 = vmatprep.subr.bf16.mxu0 (!%p2108_p6), %v2573_v13 }
 0x8c2   : > { %2134 = vmatpush3.bf16.msra.mxu0 (!%p2108_p6), %v2461_v26 }
 0x8c3   : > { %2135 = vmatprep.subr.bf16.mxu0 (!%p2108_p6), %v2573_v13 }
 0x8c6   : > { %2136 = vmatpush3.bf16.msra.mxu0 %v2462_v18 }
 0x8c7   : > { %2137 = vmatprep.subr.bf16.mxu0 %v2573_v13 }
 0x8ca   : > { %2138 = vmatpush3.bf16.msra.mxu0 %v2463_v22 }
 0x8cb   : > { %2139 = vmatprep.subr.bf16.mxu0 %v2573_v13 }
 0x8ce   : > { %2140 = vmatpush3.bf16.msra.mxu0 %v2464_v2 }
 0x8cf   : > { %2141 = vmatprep.subr.bf16.mxu0 %v2573_v13 }
 0x8d2   : > { %2142 = vmatpush3.bf16.msra.mxu0 %v2465_v39 }
 0x8d3   : > { %2143 = vmatprep.subr.bf16.mxu0 %v2573_v13 }
 0x8d6   : > { %2144 = vmatpush3.bf16.msra.mxu0 %v2466_v0 }
 0x8d7   : > { %2145 = vmatprep.subr.bf16.mxu0 %v2573_v13 }
 0x8da   : > { %2146 = vmatpush3.bf16.msra.mxu0 %v2467_v1 }
 0x8dd   : > { %2148 = vmatmul.mubr.bf16.vlgmr.msra.gmra.mrb[0].mxu0 %v1814_v3 }
 0x9b0   : > { %v1920_v5 = vpop.f32.mrb[0].mxu0 }
 0x9b1   : > { %v1921_v7 = vadd.f32 %v2109_v4, %v1920_v5  ;;  %v2149_v51 = vpop.f32.mrb[1].mxu0 }
 0x9b2   : > { %v1923_v8 = vpop.f32.mrb[2].mxu0 }
 0x9b3   : > { %1926 = vst [vmem:[%s3464_s6] sm:$0xff] %v1921_v7  ;;  %v2150_v52 = vpop.f32.mrb[3].mxu0 }
 0x9b4 PF: > { %p19_p1 = scmp.ge.s32.totalorder %s2632_s26, 4   ;;  %s3516_s21 = smov %s2558_s22 }
 0x9b5   : > { %s3517_s22 = smov %s2562_s23  ;;  %s3518_s23 = smov %s2642_s29 }
 0x9b6   : > { %s3519_s24 = smov %s2632_s26  ;;  %21 = sbr.rel (!%p19_p1) target bundleno = 5 (0x5), region = 108 }
 0x9bd   :  { %1938 = vsyncpa [#allocation4], 1 }
 0x9be   :  { %1940 = vsyncpa [#allocation4 + $0x1], 1 }
 0x9bf   :  { %1941 = vsyncpa [#allocation6], 1 }
 0x9c0   :  { %1943 = vsyncpa [#allocation6 + $0x1], 1 }

</bundles_post_ra>
